<compile_context>
chip_gen: v5e
topology: v5e:2x2
jax: 0.10.0
libtpu: 0.0.40
codegen_flags: <defaults>
</compile_context>

<pallas_src>
import jax
import jax.numpy as jnp
from jax import lax
from jax.experimental import pallas as pl
from jax.experimental.pallas import tpu as pltpu

FRN_EPS = 1e-6
BN_EPS = 1e-5
LANES = 128


def _round_up(x, m):
    return (x + m - 1) // m * m


def _vmem_limit_bytes():
    """Generation-aware VMEM budget (v5e/v6e: 128 MiB physical, v7x: 64 MiB)."""
    try:
        cap = int(pltpu.get_tpu_info().vmem_capacity_bytes)
        return min(cap * 13 // 16, 112 * 1024 * 1024)   # ~52 MiB v7x, ~104 MiB v5e/v6e
    except Exception:
        return 48 * 1024 * 1024                          # conservative, fits every gen


def _pick_cout_tile(N, Cout, Cin, Hp2, Wp2, HoWop, out_itemsize, vmem_limit):
    """Cout tile: 256 fills the 2x256 MXUs (v6e/v7x) but only if it fits the
    VMEM budget and still leaves >=2 grid cells for the two v7x TensorCores."""
    def est(tc):
        out_blk = 2 * 4 * HoWop * tc * out_itemsize            # double-buffered output
        in_blk = 2 * 4 * Hp2 * Wp2 * Cin * 2                   # double-buffered bf16 input
        w_blk = 2 * ((9 * Cin + Cin) * tc * 2 + 4 * tc * 4)    # weights + consts
        tmp = HoWop * (9 * Cin * 2 + 3 * tc * 4)               # wide-K concat + acc/y0
        return out_blk + in_blk + w_blk + tmp
    if Cout > LANES and (N >= 2 or Cout > 2 * LANES) and est(2 * LANES) <= vmem_limit * 3 // 4:
        return 2 * LANES
    return LANES


def _make_kernel(Ho, Wo, Wop, Cin, dilation):
    d = int(dilation)
    HoWop = Ho * Wop
    inv_count = 1.0 / float(Ho * Wo)

    def kernel(xpe_ref, w0_ref, w1_ref, const_ref, out_ref):
        # xpe_ref:   (1, 2, 2, Ho+d, Wop+d, Cin) bf16  padded input, row/col phases
        # w0_ref:    (9*Cin, TC) bf16   3x3 weights, taps stacked along K
        # w1_ref:    (Cin, TC)   bf16   1x1 weights with folded BN scale
        # const_ref: (4, TC)     f32    [gamma, beta, tau, bn_bias]
        # out_ref:   (1, 2, 2, Ho*Wop, TC)  phase-major full-res output

        slices = {}

        def phase_slice(row_off, col_off):
            # x_padded[2*ho + row_off, 2*wo + col_off, :] as a (Ho*Wop, Cin) tile,
            # deduplicated (for d==1 branch1 reuses 4 of branch0's 9 taps).
            key = (row_off, col_off)
            if key not in slices:
                ph, sh = row_off & 1, row_off >> 1
                pw, sw = col_off & 1, col_off >> 1
                blk = xpe_ref[0, ph, pw, sh:sh + Ho, sw:sw + Wop, :]   # (Ho, Wop, Cin)
                slices[key] = blk.reshape(HoWop, Cin)
            return slices[key]

        # ---- branch0: dilated 3x3 stride-2 conv as ONE wide-K MXU matmul ----
        taps = [phase_slice(kh * d, kw * d) for kh in range(3) for kw in range(3)]
        x9 = jnp.concatenate(taps, axis=-1)                      # (HoWop, 9*Cin)
        acc = jnp.dot(x9, w0_ref[...], preferred_element_type=jnp.float32)

        gamma = const_ref[0:1, :]
        beta = const_ref[1:2, :]
        tau = const_ref[2:3, :]

        if Wop != Wo:
            # zero the width-padding columns so they don't pollute the FRN mean
            col = lax.broadcasted_iota(jnp.int32, (HoWop, 1), 0) % Wop
            acc = jnp.where(col < Wo, acc, 0.0)

        # FRN statistics at true stride-2 resolution; gamma folded into the
        # rsqrt scale saves one full (HoWop, TC) multiply.
        nu2 = jnp.sum(acc * acc, axis=0, keepdims=True) * inv_count
        s = gamma * lax.rsqrt(nu2 + FRN_EPS)
        y0 = jnp.maximum(acc * s + beta, tau)                    # TLU

        # ---- branch1: 1x1 conv + folded BN + ReLU per full-res phase, fused
        #      with the implicit nearest-neighbour 2x upsample of y0 ----------
        w1 = w1_ref[...]
        bias1 = jnp.broadcast_to(const_ref[3:4, :], y0.shape)    # hoisted broadcast
        for r in range(2):
            for c in range(2):
                xph = phase_slice(r + d, c + d)
                y1 = jnp.dot(xph, w1, preferred_element_type=jnp.float32)
                out_ref[0, r, c] = (jnp.maximum(y1 + bias1, 0.0) + y0).astype(out_ref.dtype)

    return kernel


def pang_unit_stride(x_nchw, params, dilation=1, out_dtype=jnp.bfloat16):
    """x_nchw: [N, Cin, H, W] float32 (H, W even).  Returns [N, Cout, H, W] out_dtype."""
    N, Cin, H, W = x_nchw.shape
    Cout = params["w0"].shape[0]
    d = int(dilation)
    assert d >= 1 and H % 2 == 0 and W % 2 == 0, "expects dilation>=1, even H/W"
    Ho, Wo = H // 2, W // 2
    Wop = _round_up(Wo, 8)          # sublane-aligned (Ho,Wop)->(Ho*Wop) reshapes
    HoWop = Ho * Wop
    Hp2, Wp2 = Ho + d, Wop + d

    vmem_limit = _vmem_limit_bytes()
    TC = _pick_cout_tile(N, Cout, Cin, Hp2, Wp2, HoWop,
                         jnp.dtype(out_dtype).itemsize, vmem_limit)
    Cp = _round_up(Cout, TC)
    n_ct = Cp // TC

    # ---- layout prep: pad + phase split (one pass over x, no im2col) -------
    x = jnp.transpose(x_nchw, (0, 2, 3, 1)).astype(jnp.float32)        # NHWC
    xp = jnp.pad(x, ((0, 0), (d, d), (d, 2 * Wop - W + d), (0, 0)))    # [N,H+2d,2*Wop+2d,C]
    xpe = xp.reshape(N, Hp2, 2, Wp2, 2, Cin).transpose(0, 2, 4, 1, 3, 5)
    xpe = xpe.astype(jnp.bfloat16)                                     # [N,2,2,Hp2,Wp2,Cin]

    # 3x3 weights with taps stacked along K=(kh,kw,ci); 1x1 weights w/ BN scale folded
    w0t = jnp.transpose(params["w0"], (2, 3, 1, 0)).reshape(9 * Cin, Cout)
    w0t = jnp.pad(w0t, ((0, 0), (0, Cp - Cout))).astype(jnp.bfloat16)
    w1 = params["w1"].reshape(Cout, Cin).T * params["bn_scale"][None, :]
    w1 = jnp.pad(w1, ((0, 0), (0, Cp - Cout))).astype(jnp.bfloat16)
    consts = jnp.concatenate(
        [params["frn"].astype(jnp.float32),
         params["bn_bias"][None, :].astype(jnp.float32)], axis=0)      # [4, Cout]
    consts = jnp.pad(consts, ((0, 0), (0, Cp - Cout)))                 # [4, Cp]

    kernel = _make_kernel(Ho, Wo, Wop, Cin, d)
    out = pl.pallas_call(
        kernel,
        out_shape=jax.ShapeDtypeStruct((N, 2, 2, HoWop, Cp), out_dtype),
        grid_spec=pltpu.PrefetchScalarGridSpec(
            num_scalar_prefetch=0,
            grid=(N, n_ct),
            in_specs=[
                pl.BlockSpec((1, 2, 2, Hp2, Wp2, Cin),
                             lambda n, j: (n, 0, 0, 0, 0, 0)),
                pl.BlockSpec((9 * Cin, TC), lambda n, j: (0, j)),
                pl.BlockSpec((Cin, TC), lambda n, j: (0, j)),
                pl.BlockSpec((4, TC), lambda n, j: (0, j)),
            ],
            out_specs=pl.BlockSpec((1, 2, 2, HoWop, TC),
                                   lambda n, j: (n, 0, 0, 0, j)),
        ),
        compiler_params=pltpu.CompilerParams(
            dimension_semantics=("parallel", "parallel"),
            vmem_limit_bytes=vmem_limit,
        ),
    )(xpe, w0t, w1, consts)

    # phase-major -> NCHW in ONE permutation pass (crop Wop / Cout padding first)
    out = out.reshape(N, 2, 2, Ho, Wop, Cp)[:, :, :, :, :Wo, :Cout]
    out = out.transpose(0, 5, 3, 1, 4, 2).reshape(N, Cout, H, W)
    return out


def _reference(x_nchw, params, dilation=1):
    """Pure-JAX (XLA conv) reference matching the PyTorch forward semantics."""
    d = int(dilation)
    hi = lax.Precision.HIGHEST
    y0 = lax.conv_general_dilated(
        x_nchw, params["w0"], (2, 2), [(d, d), (d, d)], rhs_dilation=(d, d),
        dimension_numbers=("NCHW", "OIHW", "NCHW"), precision=hi)
    gamma = params["frn"][0][None, :, None, None]
    beta = params["frn"][1][None, :, None, None]
    tau = params["frn"][2][None, :, None, None]
    nu2 = jnp.mean(y0 * y0, axis=(2, 3), keepdims=True)
    y0 = jnp.maximum(gamma * (y0 * lax.rsqrt(nu2 + FRN_EPS)) + beta, tau)
    y0 = jnp.repeat(jnp.repeat(y0, 2, axis=2), 2, axis=3)  # F.upsample_nearest x2
    y1 = lax.conv_general_dilated(
        x_nchw, params["w1"], (1, 1), [(0, 0), (0, 0)],
        dimension_numbers=("NCHW", "OIHW", "NCHW"), precision=hi)
    y1 = jnp.maximum(
        y1 * params["bn_scale"][None, :, None, None]
        + params["bn_bias"][None, :, None, None], 0.0)
    return y1 + y0


def make_params(key, cin, cout):
    ks = jax.random.split(key, 8)
    w0 = 0.2 * jax.random.normal(ks[0], (cout, cin, 3, 3), jnp.float32)
    w1 = 0.5 * jax.random.normal(ks[1], (cout, cin, 1, 1), jnp.float32)
    frn = jnp.stack([
        1.0 + 0.1 * jax.random.normal(ks[2], (cout,), jnp.float32),   # gamma
        0.1 * jax.random.normal(ks[3], (cout,), jnp.float32),         # beta
        0.05 * jax.random.normal(ks[4], (cout,), jnp.float32),        # tau
    ])
    bn_gamma = 1.0 + 0.1 * jax.random.normal(ks[5], (cout,), jnp.float32)
    bn_beta = 0.1 * jax.random.normal(ks[6], (cout,), jnp.float32)
    running_mean = 0.05 * jnp.arange(cout, dtype=jnp.float32)
    running_var = 1.0 + 0.1 * jnp.arange(cout, dtype=jnp.float32)
    bn_scale = bn_gamma * lax.rsqrt(running_var + BN_EPS)
    bn_bias = bn_beta - running_mean * bn_scale
    return {"w0": w0, "w1": w1, "frn": frn,
            "bn_scale": bn_scale, "bn_bias": bn_bias}


if __name__ == "__main__":
    key = jax.random.PRNGKey(0)
    kx, kp = jax.random.split(key)

    N, Cin, Cout, H, W = 2, 4, 8, 16, 16
    x = jax.random.normal(kx, (N, Cin, H, W), jnp.float32)
    params = make_params(kp, Cin, Cout)

    # f32 output, dilation 1 & 2 — tight tolerance
    for dilation in (1, 2):
        out = jax.block_until_ready(
            pang_unit_stride(x, params, dilation=dilation, out_dtype=jnp.float32))
        assert out.shape == (N, Cout, H, W), out.shape
        ref = jax.block_until_ready(_reference(x, params, dilation=dilation))
        err = float(jnp.max(jnp.abs(out - ref)))
        assert err < 5e-2, f"dilation={dilation}: max abs error {err}"

    # bf16 output path (halved HBM writes / VMEM out block) — bf16-rounding tolerance
    out_b = jax.block_until_ready(
        pang_unit_stride(x, params, dilation=1, out_dtype=jnp.bfloat16))
    ref = jax.block_until_ready(_reference(x, params, dilation=1))
    err = float(jnp.max(jnp.abs(out_b.astype(jnp.float32) - ref)))
    tol = 5e-2 + 0.02 * float(jnp.max(jnp.abs(ref)))
    assert err < tol, f"bf16 out: max abs error {err} (tol {tol})"

    # Wo not a multiple of 8 -> exercises width padding + masked FRN mean
    H2, W2 = 12, 12
    x2 = jax.random.normal(kx, (N, Cin, H2, W2), jnp.float32)
    out2 = jax.block_until_ready(
        pang_unit_stride(x2, params, dilation=1, out_dtype=jnp.float32))
    assert out2.shape == (N, Cout, H2, W2), out2.shape
    ref2 = jax.block_until_ready(_reference(x2, params, dilation=1))
    err2 = float(jnp.max(jnp.abs(out2 - ref2)))
    assert err2 < 5e-2, f"Wo-padded case: max abs error {err2}"

    print("KERNEL_OK")
</pallas_src>

<mosaic_0001>
module attributes {stable_mosaic.version = 11 : i64} {
  func.func @kernel(%arg0: i32, %arg1: i32, %arg2: memref<1x2x2x9x9x4xbf16, #tpu.memory_space<vmem>>, %arg3: memref<36x128xbf16, #tpu.memory_space<vmem>>, %arg4: memref<4x128xbf16, #tpu.memory_space<vmem>>, %arg5: memref<4x128xf32, #tpu.memory_space<vmem>>, %arg6: memref<1x2x2x64x128xf32, #tpu.memory_space<vmem>>) attributes {dimension_semantics = [#tpu.dimension_semantics<parallel>, #tpu.dimension_semantics<parallel>], iteration_bounds = array<i64: 2, 1>, scalar_prefetch = 0 : i64, scratch_operands = 0 : i64, tpu.core_type = #tpu.core_type<tc>, window_params = [{transform_indices = @transform_0, window_bounds = array<i64: 1, 2, 2, 9, 9, 4>}, {transform_indices = @transform_1, window_bounds = array<i64: 36, 128>}, {transform_indices = @transform_2, window_bounds = array<i64: 4, 128>}, {transform_indices = @transform_3, window_bounds = array<i64: 4, 128>}, {transform_indices = @transform_4, window_bounds = array<i64: 1, 2, 2, 64, 128>}]} {
    %c0 = arith.constant 0 : index
    %c0_0 = arith.constant 0 : index
    %c0_1 = arith.constant 0 : index
    %c0_2 = arith.constant 0 : index
    %c0_3 = arith.constant 0 : index
    %c0_4 = arith.constant 0 : index
    %0 = vector.load %arg2[%c0, %c0_0, %c0_1, %c0_2, %c0_3, %c0_4] : memref<1x2x2x9x9x4xbf16, #tpu.memory_space<vmem>>, vector<1x1x1x8x8x4xbf16>
    %1 = vector.shape_cast %0 : vector<1x1x1x8x8x4xbf16> to vector<8x8x4xbf16>
    %2 = vector.shape_cast %1 : vector<8x8x4xbf16> to vector<64x4xbf16>
    %c0_5 = arith.constant 0 : index
    %c0_6 = arith.constant 0 : index
    %c1 = arith.constant 1 : index
    %c0_7 = arith.constant 0 : index
    %c0_8 = arith.constant 0 : index
    %c0_9 = arith.constant 0 : index
    %3 = vector.load %arg2[%c0_5, %c0_6, %c1, %c0_7, %c0_8, %c0_9] : memref<1x2x2x9x9x4xbf16, #tpu.memory_space<vmem>>, vector<1x1x1x8x8x4xbf16>
    %4 = vector.shape_cast %3 : vector<1x1x1x8x8x4xbf16> to vector<8x8x4xbf16>
    %5 = vector.shape_cast %4 : vector<8x8x4xbf16> to vector<64x4xbf16>
    %c0_10 = arith.constant 0 : index
    %c0_11 = arith.constant 0 : index
    %c0_12 = arith.constant 0 : index
    %c0_13 = arith.constant 0 : index
    %c1_14 = arith.constant 1 : index
    %c0_15 = arith.constant 0 : index
    %6 = vector.load %arg2[%c0_10, %c0_11, %c0_12, %c0_13, %c1_14, %c0_15] : memref<1x2x2x9x9x4xbf16, #tpu.memory_space<vmem>>, vector<1x1x1x8x8x4xbf16>
    %7 = vector.shape_cast %6 : vector<1x1x1x8x8x4xbf16> to vector<8x8x4xbf16>
    %8 = vector.shape_cast %7 : vector<8x8x4xbf16> to vector<64x4xbf16>
    %c0_16 = arith.constant 0 : index
    %c1_17 = arith.constant 1 : index
    %c0_18 = arith.constant 0 : index
    %c0_19 = arith.constant 0 : index
    %c0_20 = arith.constant 0 : index
    %c0_21 = arith.constant 0 : index
    %9 = vector.load %arg2[%c0_16, %c1_17, %c0_18, %c0_19, %c0_20, %c0_21] : memref<1x2x2x9x9x4xbf16, #tpu.memory_space<vmem>>, vector<1x1x1x8x8x4xbf16>
    %10 = vector.shape_cast %9 : vector<1x1x1x8x8x4xbf16> to vector<8x8x4xbf16>
    %11 = vector.shape_cast %10 : vector<8x8x4xbf16> to vector<64x4xbf16>
    %c0_22 = arith.constant 0 : index
    %c1_23 = arith.constant 1 : index
    %c1_24 = arith.constant 1 : index
    %c0_25 = arith.constant 0 : index
    %c0_26 = arith.constant 0 : index
    %c0_27 = arith.constant 0 : index
    %12 = vector.load %arg2[%c0_22, %c1_23, %c1_24, %c0_25, %c0_26, %c0_27] : memref<1x2x2x9x9x4xbf16, #tpu.memory_space<vmem>>, vector<1x1x1x8x8x4xbf16>
    %13 = vector.shape_cast %12 : vector<1x1x1x8x8x4xbf16> to vector<8x8x4xbf16>
    %14 = vector.shape_cast %13 : vector<8x8x4xbf16> to vector<64x4xbf16>
    %c0_28 = arith.constant 0 : index
    %c1_29 = arith.constant 1 : index
    %c0_30 = arith.constant 0 : index
    %c0_31 = arith.constant 0 : index
    %c1_32 = arith.constant 1 : index
    %c0_33 = arith.constant 0 : index
    %15 = vector.load %arg2[%c0_28, %c1_29, %c0_30, %c0_31, %c1_32, %c0_33] : memref<1x2x2x9x9x4xbf16, #tpu.memory_space<vmem>>, vector<1x1x1x8x8x4xbf16>
    %16 = vector.shape_cast %15 : vector<1x1x1x8x8x4xbf16> to vector<8x8x4xbf16>
    %17 = vector.shape_cast %16 : vector<8x8x4xbf16> to vector<64x4xbf16>
    %c0_34 = arith.constant 0 : index
    %c0_35 = arith.constant 0 : index
    %c0_36 = arith.constant 0 : index
    %c1_37 = arith.constant 1 : index
    %c0_38 = arith.constant 0 : index
    %c0_39 = arith.constant 0 : index
    %18 = vector.load %arg2[%c0_34, %c0_35, %c0_36, %c1_37, %c0_38, %c0_39] : memref<1x2x2x9x9x4xbf16, #tpu.memory_space<vmem>>, vector<1x1x1x8x8x4xbf16>
    %19 = vector.shape_cast %18 : vector<1x1x1x8x8x4xbf16> to vector<8x8x4xbf16>
    %20 = vector.shape_cast %19 : vector<8x8x4xbf16> to vector<64x4xbf16>
    %c0_40 = arith.constant 0 : index
    %c0_41 = arith.constant 0 : index
    %c1_42 = arith.constant 1 : index
    %c1_43 = arith.constant 1 : index
    %c0_44 = arith.constant 0 : index
    %c0_45 = arith.constant 0 : index
    %21 = vector.load %arg2[%c0_40, %c0_41, %c1_42, %c1_43, %c0_44, %c0_45] : memref<1x2x2x9x9x4xbf16, #tpu.memory_space<vmem>>, vector<1x1x1x8x8x4xbf16>
    %22 = vector.shape_cast %21 : vector<1x1x1x8x8x4xbf16> to vector<8x8x4xbf16>
    %23 = vector.shape_cast %22 : vector<8x8x4xbf16> to vector<64x4xbf16>
    %c0_46 = arith.constant 0 : index
    %c0_47 = arith.constant 0 : index
    %c0_48 = arith.constant 0 : index
    %c1_49 = arith.constant 1 : index
    %c1_50 = arith.constant 1 : index
    %c0_51 = arith.constant 0 : index
    %24 = vector.load %arg2[%c0_46, %c0_47, %c0_48, %c1_49, %c1_50, %c0_51] : memref<1x2x2x9x9x4xbf16, #tpu.memory_space<vmem>>, vector<1x1x1x8x8x4xbf16>
    %25 = vector.shape_cast %24 : vector<1x1x1x8x8x4xbf16> to vector<8x8x4xbf16>
    %26 = vector.shape_cast %25 : vector<8x8x4xbf16> to vector<64x4xbf16>
    %27 = tpu.concatenate %2, %5, %8, %11, %14, %17, %20, %23, %26 in 1 : vector<64x4xbf16>, vector<64x4xbf16>, vector<64x4xbf16>, vector<64x4xbf16>, vector<64x4xbf16>, vector<64x4xbf16>, vector<64x4xbf16>, vector<64x4xbf16>, vector<64x4xbf16> -> vector<64x36xbf16>
    %c0_52 = arith.constant 0 : index
    %c0_53 = arith.constant 0 : index
    %28 = vector.load %arg3[%c0_52, %c0_53] : memref<36x128xbf16, #tpu.memory_space<vmem>>, vector<36x128xbf16>
    %cst = arith.constant dense<0.000000e+00> : vector<64x128xf32>
    %29 = tpu.matmul %27, %28, %cst {dimension_numbers = #tpu.dot_dimension_numbers<[1], [0], [0], [1], [0, 0, 1, 1], [], []>} : vector<64x36xbf16>, vector<36x128xbf16>, vector<64x128xf32> -> vector<64x128xf32>
    %c0_54 = arith.constant 0 : index
    %c0_55 = arith.constant 0 : index
    %30 = vector.load %arg5[%c0_54, %c0_55] : memref<4x128xf32, #tpu.memory_space<vmem>>, vector<1x128xf32>
    %c1_56 = arith.constant 1 : index
    %c0_57 = arith.constant 0 : index
    %31 = vector.load %arg5[%c1_56, %c0_57] : memref<4x128xf32, #tpu.memory_space<vmem>>, vector<1x128xf32>
    %c2 = arith.constant 2 : index
    %c0_58 = arith.constant 0 : index
    %32 = vector.load %arg5[%c2, %c0_58] : memref<4x128xf32, #tpu.memory_space<vmem>>, vector<1x128xf32>
    %33 = arith.mulf %29, %29 : vector<64x128xf32>
    %cst_59 = arith.constant dense<0.000000e+00> : vector<128xf32>
    %34 = vector.multi_reduction <add>, %33, %cst_59 [0] : vector<64x128xf32> to vector<128xf32>
    %35 = vector.shape_cast %34 : vector<128xf32> to vector<1x128xf32>
    %cst_60 = arith.constant 1.562500e-02 : f32
    %36 = vector.broadcast %cst_60 : f32 to vector<1x128xf32>
    %37 = arith.mulf %35, %36 : vector<1x128xf32>
    %cst_61 = arith.constant 9.99999997E-7 : f32
    %38 = vector.broadcast %cst_61 : f32 to vector<1x128xf32>
    %39 = arith.addf %37, %38 : vector<1x128xf32>
    %40 = math.rsqrt %39 : vector<1x128xf32>
    %41 = arith.mulf %30, %40 : vector<1x128xf32>
    %42 = vector.broadcast %41 : vector<1x128xf32> to vector<64x128xf32>
    %43 = arith.mulf %29, %42 : vector<64x128xf32>
    %44 = vector.broadcast %31 : vector<1x128xf32> to vector<64x128xf32>
    %45 = arith.addf %43, %44 : vector<64x128xf32>
    %46 = vector.broadcast %32 : vector<1x128xf32> to vector<64x128xf32>
    %47 = arith.maximumf %45, %46 : vector<64x128xf32>
    %c0_62 = arith.constant 0 : index
    %c0_63 = arith.constant 0 : index
    %48 = vector.load %arg4[%c0_62, %c0_63] : memref<4x128xbf16, #tpu.memory_space<vmem>>, vector<4x128xbf16>
    %c3 = arith.constant 3 : index
    %c0_64 = arith.constant 0 : index
    %49 = vector.load %arg5[%c3, %c0_64] : memref<4x128xf32, #tpu.memory_space<vmem>>, vector<1x128xf32>
    %50 = vector.shape_cast %49 : vector<1x128xf32> to vector<1x128xf32>
    %51 = vector.broadcast %50 : vector<1x128xf32> to vector<64x128xf32>
    %cst_65 = arith.constant dense<0.000000e+00> : vector<64x128xf32>
    %52 = tpu.matmul %14, %48, %cst_65 {dimension_numbers = #tpu.dot_dimension_numbers<[1], [0], [0], [1], [0, 0, 1, 1], [], []>} : vector<64x4xbf16>, vector<4x128xbf16>, vector<64x128xf32> -> vector<64x128xf32>
    %53 = arith.addf %52, %51 : vector<64x128xf32>
    %cst_66 = arith.constant 0.000000e+00 : f32
    %54 = vector.broadcast %cst_66 : f32 to vector<64x128xf32>
    %55 = arith.maximumf %53, %54 : vector<64x128xf32>
    %56 = arith.addf %55, %47 : vector<64x128xf32>
    %c0_67 = arith.constant 0 : index
    %c0_68 = arith.constant 0 : index
    %c0_69 = arith.constant 0 : index
    %c0_70 = arith.constant 0 : index
    %c0_71 = arith.constant 0 : index
    %57 = vector.load %arg6[%c0_67, %c0_68, %c0_69, %c0_70, %c0_71] : memref<1x2x2x64x128xf32, #tpu.memory_space<vmem>>, vector<1x1x1x64x128xf32>
    %58 = vector.shape_cast %57 : vector<1x1x1x64x128xf32> to vector<64x128xf32>
    %59 = vector.shape_cast %56 : vector<64x128xf32> to vector<1x1x1x64x128xf32>
    tpu.vector_store %arg6[%c0_67, %c0_68, %c0_69, %c0_70, %c0_71], %59 {strides = array<i32>} : memref<1x2x2x64x128xf32, #tpu.memory_space<vmem>>, vector<1x1x1x64x128xf32>,
    %cst_72 = arith.constant dense<0.000000e+00> : vector<64x128xf32>
    %60 = tpu.matmul %17, %48, %cst_72 {dimension_numbers = #tpu.dot_dimension_numbers<[1], [0], [0], [1], [0, 0, 1, 1], [], []>} : vector<64x4xbf16>, vector<4x128xbf16>, vector<64x128xf32> -> vector<64x128xf32>
    %61 = arith.addf %60, %51 : vector<64x128xf32>
    %cst_73 = arith.constant 0.000000e+00 : f32
    %62 = vector.broadcast %cst_73 : f32 to vector<64x128xf32>
    %63 = arith.maximumf %61, %62 : vector<64x128xf32>
    %64 = arith.addf %63, %47 : vector<64x128xf32>
    %c0_74 = arith.constant 0 : index
    %c0_75 = arith.constant 0 : index
    %c1_76 = arith.constant 1 : index
    %c0_77 = arith.constant 0 : index
    %c0_78 = arith.constant 0 : index
    %65 = vector.load %arg6[%c0_74, %c0_75, %c1_76, %c0_77, %c0_78] : memref<1x2x2x64x128xf32, #tpu.memory_space<vmem>>, vector<1x1x1x64x128xf32>
    %66 = vector.shape_cast %65 : vector<1x1x1x64x128xf32> to vector<64x128xf32>
    %67 = vector.shape_cast %64 : vector<64x128xf32> to vector<1x1x1x64x128xf32>
    tpu.vector_store %arg6[%c0_74, %c0_75, %c1_76, %c0_77, %c0_78], %67 {strides = array<i32>} : memref<1x2x2x64x128xf32, #tpu.memory_space<vmem>>, vector<1x1x1x64x128xf32>,
    %cst_79 = arith.constant dense<0.000000e+00> : vector<64x128xf32>
    %68 = tpu.matmul %23, %48, %cst_79 {dimension_numbers = #tpu.dot_dimension_numbers<[1], [0], [0], [1], [0, 0, 1, 1], [], []>} : vector<64x4xbf16>, vector<4x128xbf16>, vector<64x128xf32> -> vector<64x128xf32>
    %69 = arith.addf %68, %51 : vector<64x128xf32>
    %cst_80 = arith.constant 0.000000e+00 : f32
    %70 = vector.broadcast %cst_80 : f32 to vector<64x128xf32>
    %71 = arith.maximumf %69, %70 : vector<64x128xf32>
    %72 = arith.addf %71, %47 : vector<64x128xf32>
    %c0_81 = arith.constant 0 : index
    %c1_82 = arith.constant 1 : index
    %c0_83 = arith.constant 0 : index
    %c0_84 = arith.constant 0 : index
    %c0_85 = arith.constant 0 : index
    %73 = vector.load %arg6[%c0_81, %c1_82, %c0_83, %c0_84, %c0_85] : memref<1x2x2x64x128xf32, #tpu.memory_space<vmem>>, vector<1x1x1x64x128xf32>
    %74 = vector.shape_cast %73 : vector<1x1x1x64x128xf32> to vector<64x128xf32>
    %75 = vector.shape_cast %72 : vector<64x128xf32> to vector<1x1x1x64x128xf32>
    tpu.vector_store %arg6[%c0_81, %c1_82, %c0_83, %c0_84, %c0_85], %75 {strides = array<i32>} : memref<1x2x2x64x128xf32, #tpu.memory_space<vmem>>, vector<1x1x1x64x128xf32>,
    %cst_86 = arith.constant dense<0.000000e+00> : vector<64x128xf32>
    %76 = tpu.matmul %26, %48, %cst_86 {dimension_numbers = #tpu.dot_dimension_numbers<[1], [0], [0], [1], [0, 0, 1, 1], [], []>} : vector<64x4xbf16>, vector<4x128xbf16>, vector<64x128xf32> -> vector<64x128xf32>
    %77 = arith.addf %76, %51 : vector<64x128xf32>
    %cst_87 = arith.constant 0.000000e+00 : f32
    %78 = vector.broadcast %cst_87 : f32 to vector<64x128xf32>
    %79 = arith.maximumf %77, %78 : vector<64x128xf32>
    %80 = arith.addf %79, %47 : vector<64x128xf32>
    %c0_88 = arith.constant 0 : index
    %c1_89 = arith.constant 1 : index
    %c1_90 = arith.constant 1 : index
    %c0_91 = arith.constant 0 : index
    %c0_92 = arith.constant 0 : index
    %81 = vector.load %arg6[%c0_88, %c1_89, %c1_90, %c0_91, %c0_92] : memref<1x2x2x64x128xf32, #tpu.memory_space<vmem>>, vector<1x1x1x64x128xf32>
    %82 = vector.shape_cast %81 : vector<1x1x1x64x128xf32> to vector<64x128xf32>
    %83 = vector.shape_cast %80 : vector<64x128xf32> to vector<1x1x1x64x128xf32>
    tpu.vector_store %arg6[%c0_88, %c1_89, %c1_90, %c0_91, %c0_92], %83 {strides = array<i32>} : memref<1x2x2x64x128xf32, #tpu.memory_space<vmem>>, vector<1x1x1x64x128xf32>,
    return
  }
  func.func @transform_0(%arg0: i32, %arg1: i32) -> (i32, i32, i32, i32, i32, i32) {
    %c0_i32 = arith.constant 0 : i32
    %c0_i32_0 = arith.constant 0 : i32
    %c0_i32_1 = arith.constant 0 : i32
    %c0_i32_2 = arith.constant 0 : i32
    %c0_i32_3 = arith.constant 0 : i32
    %c0_i32_4 = arith.constant 0 : i32
    return %arg0, %c0_i32, %c0_i32_0, %c0_i32_1, %c0_i32_2, %c0_i32_3 : i32, i32, i32, i32, i32, i32
  }
  func.func @transform_1(%arg0: i32, %arg1: i32) -> (i32, i32) {
    %c0_i32 = arith.constant 0 : i32
    %c0_i32_0 = arith.constant 0 : i32
    return %c0_i32, %arg1 : i32, i32
  }
  func.func @transform_2(%arg0: i32, %arg1: i32) -> (i32, i32) {
    %c0_i32 = arith.constant 0 : i32
    %c0_i32_0 = arith.constant 0 : i32
    return %c0_i32, %arg1 : i32, i32
  }
  func.func @transform_3(%arg0: i32, %arg1: i32) -> (i32, i32) {
    %c0_i32 = arith.constant 0 : i32
    %c0_i32_0 = arith.constant 0 : i32
    return %c0_i32, %arg1 : i32, i32
  }
  func.func @transform_4(%arg0: i32, %arg1: i32) -> (i32, i32, i32, i32, i32) {
    %c0_i32 = arith.constant 0 : i32
    %c0_i32_0 = arith.constant 0 : i32
    %c0_i32_1 = arith.constant 0 : i32
    %c0_i32_2 = arith.constant 0 : i32
    return %arg0, %c0_i32, %c0_i32_0, %c0_i32_1, %arg1 : i32, i32, i32, i32, i32
  }
}

</mosaic_0001>

<bundles_post_ra>
// kernel: tpu_custom_call.1
= control target key start
LH: loop header
LB: loop body
LE: loop exit
PB: predicated region body
PF: predicated region fallthrough
CT: control target
= control target key end

     0   :  { %9 = vsyncpa [#allocation3], 0  ;;  %s2552_s0 = inlined_call_operand.vmem [shape: bf16[2,2,2,9,9,4], index: 0, kind: input, shape index: {}]   ;;  %s2553_s1 = inlined_call_operand.vmem [shape: bf16[36,128], index: 1, kind: input, shape index: {}]   ;;  %s2554_s2 = inlined_call_operand.vmem [shape: bf16[4,128], index: 2, kind: input, shape index: {}]   ;;  %s2555_s3 = inlined_call_operand.vmem [shape: f32[4,128], index: 3, kind: input, shape index: {}]   ;;  %s2556_s4 = inlined_call_operand.hbm [shape: f32[2,2,2,64,128], index: 4, kind: output, shape index: {}]  }
   0x1   :  { %11 = vsyncpa [#allocation3 + $0x1], 0  ;;  %s1936_s15 = smov 0   ;;  %s1938_s16 = smov 0  }
   0x2   :  { %s1940_s17 = smov 0   ;;  %s1942_s18 = smov 0  }
   0x3   :  { %s1944_s19 = smov 0   ;;  %s1946_s20 = smov 0  }
   0x4 LB: > { %s1503_s21 = sadd.s32 4294967295, %s1900_s20   ;;  %s1504_s22 = sadd.s32 4294967294, %s1900_s20   ;;  %s1900_s20 = sphi %s1946_s20, %s17_s20   ;;  %s1896_s19 = sphi %s1944_s19, %s2565_s19   ;;  %s1892_s18 = sphi %s1942_s18, %s2564_s18   ;;  %s1888_s17 = sphi %s1940_s17, %s2563_s17   ;;  %s1884_s16 = sphi %s1938_s16, %s2562_s16   ;;  %s1880_s15 = sphi %s1936_s15, %s2561_s15  }
   0x5   : > { %s29_s23 = sadd.s32 1, %s1896_s19  ;;  %s142_s24 = sadd.s32 1, %s1888_s17 }
   0x6   : > { %p31_p0 = scmp.ge.s32.totalorder %s29_s23, 2  ;;  %p152_p1 = scmp.ne.s32.totalorder %s1888_s17, %s1884_s16 }
   0x7   : > { %p153_p2 = scmp.eq.s32.totalorder %s1503_s21, 1  ;;  %p158_p3 = scmp.ne.s32.totalorder %s1884_s16, %s1880_s15 }
   0x8   : > { %s2567_s23 = smov (%p31_p0, %s29_s23), 0  ;;  %p159_p5 = scmp.eq.s32.totalorder %s1504_s22, 1 }
   0x9   : > { %p1976_p4 = por %p153_p2, %p152_p1  ;;  %s137_s26 = ssub.s32 %s1896_s19, %s2567_s23 }
   0xa   : > { %p1510_p6 = scmp.ge.s32.totalorder %s1900_s20, 1  ;;  %p140_p7 = scmp.eq.s32.totalorder %s137_s26, 0 }
   0xb   : > { %p1983_p8 = por %p159_p5, %p158_p3  ;;  %p206_p9 = scmp.lt.s32.totalorder %s1900_s20, 3 }
   0xc   : > { %s1989_s28 = scalar_select %p140_p7, %s1888_s17, %s142_s24  }
   0xd   : > { %p207_p10 = pnand %p1510_p6, %p206_p9 }
   0xe   : > { %p244_p11 = scmp.lt.s32.totalorder (!%p207_p10), %s1892_s18, 1  ;;  %s1902_s8 = smov (!%p207_p10), 4  }
   0xf   : > { %210 = sbr.rel (%p207_p10) target bundleno = 445 (0x1bd), region = 36  ;;  %s1903_s9 = smov (!%p207_p10), 12  }
  0x10   : > { %s1904_s10 = smov (!%p207_p10), 28   ;;  %s1905_s11 = smov (!%p207_p10), 16  }
  0x11   : > { %s1906_s12 = smov (!%p207_p10), 8   ;;  %s1907_s13 = smov (!%p207_p10), 24  }
  0x12   : > { %s1908_s14 = smov (!%p207_p10), 32   ;;  %s1909_s21 = smov (!%p207_p10), 20  }
  0x13   : > { %s1842_s22 = scalar_lea.hbm (!%p207_p10), %s2556_s4, 512 }
  0x14   : > { %s245_s29 = scalar_select %p244_p11, %s1892_s18, 1  ;;  %vm287_vm0 = vsmask.f32 3328  ;;  %vm288_vm1 = vsmask.f32 7440  ;;  %vm1003_vm3 = vcmask 1041408  }
  0x15   : > { %vm2023_vm2 = vmor %vm287_vm0, %vm288_vm1  ;;  %vm898_vm4 = vcmask 31744   ;;  %vm911_vm5 = vcmask 64512   ;;  %vm920_vm6 = vcmask 97280   ;;  %vm929_vm7 = vcmask 130048  }
  0x16   : > { %s1752_s30 = smul.u32 288, %s245_s29  ;;  %vm938_vm8 = vcmask 162816   ;;  %vm947_vm9 = vcmask 195584   ;;  %vm956_vm10 = vcmask 228352   ;;  %vm965_vm11 = vcmask 261120  }
  0x17   : > { %vm994_vm12 = vcmask 293888  }
  0x18   : > { %s1996_s7 = scalar_lea.vmem %s2552_s0, %s1752_s30  ;;  %s1748_s30 = sshll.u32 %s1892_s18, 8 }
  0x19   : > { %v1587_v0 = vld [vmem:[%s1996_s7 + $0x48] sm:$0xf]  ;;  %v1726_v1 = vld [vmem:[%s1996_s7 + $0x4c] sm:$0xf0]  ;;  %v1730_v4 = vld [vmem:[%s1996_s7 + $0x94] sm:$0xf0]  ;;  %s1382_s18 = scalar_lea.hbm %s2556_s4, %s1748_s30 }
  0x1a   : > { %v1603_v2 = vld [vmem:[%s1996_s7 + $0x90] sm:$0xf]  ;;  %v1588_v3 = vor.u32 %v1726_v1, %v1587_v0  ;;  %v1742_v6 = vld [vmem:[%s1996_s7 + $0x54] sm:$0xf0]  ;;  %v1734_v9 = vld [vmem:[%s1996_s7 + $0xdc] sm:$0xf0] }
  0x1b   : > { %v1651_v5 = vld [vmem:[%s1996_s7 + $0x50] sm:$0xf]  ;;  %v1604_v7 = vor.u32 %v1730_v4, %v1603_v2  ;;  %v1619_v8 = vld [vmem:[%s1996_s7 + $0xd8] sm:$0xf]  ;;  %v262_v10 = vld [vmem:[%s1996_s7] sm:$0xf] }
  0x1c   : > { %718 = vrot.lane.b32.xlu0 %v1588_v3, %s1902_s8  ;;  %v263_v11 = vld [vmem:[%s1996_s7 + $0x8] sm:$0xf]  ;;  %v279_v12 = vld [vmem:[%s1996_s7 + $0x4] sm:$0x1]  ;;  %v280_v13 = vld [vmem:[%s1996_s7 + $0xc] sm:$0x1]  ;;  %v2013_v19 = vor.u32 %v1742_v6, %v1651_v5  ;;  %v2015_v20 = vor.u32 %v1734_v9, %v1619_v8 }
  0x1d   : > { %766 = vrot.lane.b32.xlu1 %v1604_v7, %s1903_s9  ;;  %v291_v14 = vshrl.u32 %v262_v10, 16  ;;  %v294_v15 = vshll.u32 %v262_v10, 16  ;;  %v300_v16 = vshll.u32 %v279_v12, 16  ;;  %v305_v17 = vshrl.u32 %v263_v11, 16  ;;  %v1545_v18 = vld [vmem:[%s1996_s7 + $0x8] sm:$0xf] }
  0x1e   : > { %v308_v21 = vshll.u32 %v263_v11, 16  ;;  %v314_v22 = vshll.u32 %v280_v13, 16  ;;  %v1546_v23 = vld [vmem:[%s1996_s7 + $0x10] sm:$0xf]  ;;  %v1561_v24 = vld [vmem:[%s1996_s7 + $0xc] sm:$0x1] }
  0x1f   : > { %v293_v25 = vrot.slane %v291_v14, 4  ;;  %v296_v26 = vrot.slane %v294_v15, 5  ;;  %v302_v27 = vrot.slane %v300_v16, 5  ;;  %v307_v28 = vrot.slane %v305_v17, 4  ;;  %v1562_v29 = vld [vmem:[%s1996_s7 + $0x14] sm:$0x1] }
  0x20   : > { %v310_v30 = vrot.slane %v308_v21, 5  ;;  %v316_v31 = vrot.slane %v314_v22, 5  ;;  %v567_v32 = vshrl.u32 %v1545_v18, 16  ;;  %v570_v33 = vshll.u32 %v1545_v18, 16  ;;  %v264_v38 = vld [vmem:[%s1996_s7 + $0x10] sm:$0xf] }
  0x21   : > { %v297_v34 = vor.u32 %v296_v26, %v293_v25  ;;  %v576_v35 = vshll.u32 %v1561_v24, 16  ;;  %v581_v36 = vshrl.u32 %v1546_v23, 16  ;;  %v584_v37 = vshll.u32 %v1546_v23, 16  ;;  %v281_v44 = vld [vmem:[%s1996_s7 + $0x14] sm:$0x1] }
  0x22   : > { %v311_v40 = vor.u32 %v310_v30, %v307_v28  ;;  %v569_v41 = vrot.slane %v567_v32, 4  ;;  %v572_v42 = vrot.slane %v570_v33, 5  ;;  %v590_v43 = vshll.u32 %v1562_v29, 16  ;;  %v265_v55 = vld [vmem:[%s1996_s7 + $0x18] sm:$0xf] }
  0x23   : > { %v298_v45 = vrot.slane %v297_v34, 4  ;;  %v578_v46 = vrot.slane %v576_v35, 5  ;;  %v583_v47 = vrot.slane %v581_v36, 4  ;;  %v586_v48 = vrot.slane %v584_v37, 5  ;;  %v282_v56 = vld [vmem:[%s1996_s7 + $0x1c] sm:$0x1] }
  0x24   : > { %870 = vrot.lane.b32.xlu0 %v2013_v19, %s1904_s10  ;;  %v312_v49 = vrot.slane %v311_v40, 4  ;;  %v573_v50 = vor.u32 %v572_v42, %v569_v41  ;;  %v592_v51 = vrot.slane %v590_v43, 5  ;;  %v319_v52 = vshrl.u32 %v264_v38, 16  ;;  %v1635_v63 = vld [vmem:[%s1996_s7 + $0x8] sm:$0xf] }
  0x25   : > { %794 = vrot.lane.b32.xlu1 %v2015_v20, %s1905_s11  ;;  %v303_v53 = vsel %vm2023_vm2, %v298_v45, %v302_v27  ;;  %v587_v54 = vor.u32 %v586_v48, %v583_v47  ;;  %v322_v57 = vshll.u32 %v264_v38, 16  ;;  %v328_v58 = vshll.u32 %v281_v44, 16  ;;  %v1738_v4 = vld [vmem:[%s1996_s7 + $0xc] sm:$0xf0]  ;;  %v1523_v9 = vld [vmem:[%s1996_s7 + $0xa0] sm:$0xf] }
  0x26   : > { %v317_v59 = vsel %vm2023_vm2, %v312_v49, %v316_v31  ;;  %v726_v60 = vunpack.c.l.b16 %v303_v53  ;;  %v574_v61 = vrot.slane %v573_v50, 4  ;;  %v321_v62 = vrot.slane %v319_v52, 4  ;;  %v2046_v14 = vld [vmem:[%s1996_s7 + $0xa0] sm:$0xf]  ;;  %v1539_v15 = vld [vmem:[%s1996_s7 + $0xa4] sm:$0x1] }
  0x27   : > { %v727_v0 = vunpack.c.l.b16 %v317_v59  ;;  %v588_v1 = vrot.slane %v587_v54, 4  ;;  %v324_v2 = vrot.slane %v322_v57, 5  ;;  %v330_v3 = vrot.slane %v328_v58, 5  ;;  %v2050_v21 = vld [vmem:[%s1996_s7 + $0xa4] sm:$0xf0] }
  0x28   : > { %v579_v5 = vsel %vm2023_vm2, %v574_v61, %v578_v46  ;;  %v333_v6 = vshrl.u32 %v265_v55, 16  ;;  %v336_v7 = vshll.u32 %v265_v55, 16  ;;  %v342_v8 = vshll.u32 %v282_v56, 16  ;;  %v1524_v22 = vld [vmem:[%s1996_s7 + $0xa8] sm:$0xf] }
  0x29   : > { %v734_v10 = vpack.c.b16 %v727_v0, %v726_v60  ;;  %v593_v11 = vsel %vm2023_vm2, %v588_v1, %v592_v51  ;;  %v878_v12 = vunpack.c.l.b16 %v579_v5  ;;  %v325_v13 = vor.u32 %v324_v2, %v321_v62  ;;  %v1540_v26 = vld [vmem:[%s1996_s7 + $0xac] sm:$0x1]  ;;  %v1591_v32 = vld [vmem:[%s1996_s7 + $0x58] sm:$0xf]  ;;  %v1727_v33 = vld [vmem:[%s1996_s7 + $0x5c] sm:$0xf0] }
  0x2a   : > { %v879_v16 = vunpack.c.l.b16 %v593_v11  ;;  %v335_v17 = vrot.slane %v333_v6, 4  ;;  %v338_v18 = vrot.slane %v336_v7, 5  ;;  %v344_v24 = vrot.slane %v342_v8, 5  ;;  %v1547_v38 = vld [vmem:[%s1996_s7 + $0x18] sm:$0xf] }
  0x2b   : > { %v326_v23 = vrot.slane %v325_v13, 4  ;;  %v1636_v25 = vor.u32 %v1738_v4, %v1635_v63  ;;  %v457_v27 = vshrl.u32 %v1523_v9, 16  ;;  %v460_v30 = vshll.u32 %v1523_v9, 16  ;;  %v1548_v44 = vld [vmem:[%s1996_s7 + $0x20] sm:$0xf] }
  0x2c   : > { %738 = vrot.lane.b32.xlu0 %v734_v10, %s1906_s12  ;;  %v2055_v28 = vpack.c.b16 %v879_v16, %v878_v12  ;;  %v339_v29 = vor.u32 %v338_v18, %v335_v17  ;;  %v466_v31 = vshll.u32 %v1539_v15, 16  ;;  %v471_v36 = vshrl.u32 %v1524_v22, 16  ;;  %v1563_v49 = vld [vmem:[%s1996_s7 + $0x1c] sm:$0x1]  ;;  %v1564_v57 = vld [vmem:[%s1996_s7 + $0x24] sm:$0x1] }
  0x2d   : > { %v331_v34 = vsel %vm2023_vm2, %v326_v23, %v330_v3  ;;  %842 = vrot.lane.b32.xlu2 %v1636_v25, %s1907_s13  ;;  %v459_v35 = vrot.slane %v457_v27, 4  ;;  %v474_v37 = vshll.u32 %v1524_v22, 16  ;;  %v1608_v42 = vor.u32 %v2050_v21, %v2046_v14  ;;  %v1521_v3 = vld [vmem:[%s1996_s7 + $0x90] sm:$0xf]  ;;  %v1537_v7 = vld [vmem:[%s1996_s7 + $0x94] sm:$0x1] }
  0x2e   : > { %890 = vrot.lane.b32.xlu1 %v2055_v28, %s1908_s14  ;;  %v340_v40 = vrot.slane %v339_v29, 4  ;;  %v728_v41 = vunpack.c.l.b16 %v331_v34  ;;  %v462_v43 = vrot.slane %v460_v30, 5  ;;  %v468_v45 = vrot.slane %v466_v31, 5  ;;  %v1639_v10 = vld [vmem:[%s1996_s7 + $0x18] sm:$0xf] }
  0x2f   : > { %v473_v46 = vrot.slane %v471_v36, 4  ;;  %v476_v47 = vrot.slane %v474_v37, 5  ;;  %v480_v48 = vshll.u32 %v1540_v26, 16  ;;  %v1592_v52 = vor.u32 %v1727_v33, %v1591_v32  ;;  %v1522_v13 = vld [vmem:[%s1996_s7 + $0x98] sm:$0xf] }
  0x30   : > { %v345_v50 = vsel %vm2023_vm2, %v340_v40, %v344_v24  ;;  %v463_v51 = vor.u32 %v462_v43, %v459_v35  ;;  %v595_v53 = vshrl.u32 %v1547_v38, 16  ;;  %v598_v58 = vshll.u32 %v1547_v38, 16  ;;  %v1739_v15 = vld [vmem:[%s1996_s7 + $0x1c] sm:$0xf0]  ;;  %v1538_v23 = vld [vmem:[%s1996_s7 + $0x9c] sm:$0x1] }
  0x31   : > { %v729_v54 = vunpack.c.l.b16 %v345_v50  ;;  %v477_v55 = vor.u32 %v476_v47, %v473_v46  ;;  %v482_v56 = vrot.slane %v480_v48, 5  ;;  %v604_v61 = vshll.u32 %v1563_v49, 16  ;;  %v1595_v40 = vld [vmem:[%s1996_s7 + $0x68] sm:$0xf]  ;;  %v268_v46 = vld [vmem:[%s1996_s7 + $0x30] sm:$0xf] }
  0x32   : > { %v464_v59 = vrot.slane %v463_v51, 4  ;;  %v597_v60 = vrot.slane %v595_v53, 4  ;;  %v609_v62 = vshrl.u32 %v1548_v44, 16  ;;  %v600_v1 = vrot.slane %v598_v58, 5  ;;  %v269_v47 = vld [vmem:[%s1996_s7 + $0x38] sm:$0xf] }
  0x33   : > { %v735_v63 = vpack.c.b16 %v729_v54, %v728_v41  ;;  %v478_v0 = vrot.slane %v477_v55, 4  ;;  %v612_v2 = vshll.u32 %v1548_v44, 16  ;;  %v618_v6 = vshll.u32 %v1564_v57, 16  ;;  %v1728_v41 = vld [vmem:[%s1996_s7 + $0x6c] sm:$0xf0] }
  0x34   : > { %v469_v4 = vsel %vm2023_vm2, %v464_v59, %v468_v45  ;;  %v611_v5 = vrot.slane %v609_v62, 4  ;;  %v601_v11 = vor.u32 %v600_v1, %v597_v60  ;;  %v606_v16 = vrot.slane %v604_v61, 5  ;;  %v266_v58 = vld [vmem:[%s1996_s7 + $0x20] sm:$0xf] }
  0x35   : > { %740 = vrot.lane.b32.xlu0 %v735_v63, %s1906_s12  ;;  %v483_v8 = vsel %vm2023_vm2, %v478_v0, %v482_v56  ;;  %v804_v9 = vunpack.c.l.b16 %v469_v4  ;;  %720 = vrot.lane.b32.xlu2 %v1592_v52, %s1902_s8  ;;  %v614_v12 = vrot.slane %v612_v2, 5  ;;  %v620_v17 = vrot.slane %v618_v6, 5  ;;  %v285_v52 = vld [vmem:[%s1996_s7 + $0x34] sm:$0x1]  ;;  %v267_v63 = vld [vmem:[%s1996_s7 + $0x28] sm:$0xf] }
  0x36   : > { %768 = vrot.lane.b32.xlu1 %v1608_v42, %s1903_s9  ;;  %v805_v14 = vunpack.c.l.b16 %v483_v8  ;;  %v429_v18 = vshrl.u32 %v1521_v3, 16  ;;  %v602_v21 = vrot.slane %v601_v11, 4  ;;  %v432_v24 = vshll.u32 %v1521_v3, 16  ;;  %v286_v4 = vld [vmem:[%s1996_s7 + $0x3c] sm:$0x1] }
  0x37   : > { %v615_v22 = vor.u32 %v614_v12, %v611_v5  ;;  %v438_v25 = vshll.u32 %v1537_v7, 16  ;;  %v443_v27 = vshrl.u32 %v1522_v13, 16  ;;  %v446_v29 = vshll.u32 %v1522_v13, 16  ;;  %v1732_v11 = vld [vmem:[%s1996_s7 + $0xb4] sm:$0xf0] }
  0x38   : > { %v431_v26 = vrot.slane %v429_v18, 4  ;;  %v2085_v30 = vpack.c.b16 %v805_v14, %v804_v9  ;;  %v1640_v31 = vor.u32 %v1739_v15, %v1639_v10  ;;  %v434_v33 = vrot.slane %v432_v24, 5  ;;  %v1611_v10 = vld [vmem:[%s1996_s7 + $0xb0] sm:$0xf]  ;;  %v1627_v12 = vld [vmem:[%s1996_s7 + $0xf8] sm:$0xf] }
  0x39   : > { %v616_v32 = vrot.slane %v615_v22, 4  ;;  %v607_v34 = vsel %vm2023_vm2, %v602_v21, %v606_v16  ;;  %v445_v35 = vrot.slane %v443_v27, 4  ;;  %v448_v36 = vrot.slane %v446_v29, 5  ;;  %v1736_v13 = vld [vmem:[%s1996_s7 + $0xfc] sm:$0xf0] }
  0x3a   : > { %v452_v37 = vshll.u32 %v1538_v23, 16  ;;  %v435_v42 = vor.u32 %v434_v33, %v431_v26  ;;  %v440_v43 = vrot.slane %v438_v25, 5  ;;  %v880_v48 = vunpack.c.l.b16 %v607_v34  ;;  %v283_v15 = vld [vmem:[%s1996_s7 + $0x24] sm:$0x1]  ;;  %v1735_v18 = vld [vmem:[%s1996_s7 + $0xec] sm:$0xf0] }
  0x3b   : > { %v621_v38 = vsel %vm2023_vm2, %v616_v32, %v620_v17  ;;  %v449_v44 = vor.u32 %v448_v36, %v445_v35  ;;  %v375_v53 = vshrl.u32 %v268_v46, 16  ;;  %v1596_v54 = vor.u32 %v1728_v41, %v1595_v40  ;;  %v1623_v17 = vld [vmem:[%s1996_s7 + $0xe8] sm:$0xf]  ;;  %v1527_v24 = vld [vmem:[%s1996_s7 + $0xc0] sm:$0xf] }
  0x3c   : > { %v454_v45 = vrot.slane %v452_v37, 5  ;;  %v881_v49 = vunpack.c.l.b16 %v621_v38  ;;  %v436_v50 = vrot.slane %v435_v42, 4  ;;  %v378_v56 = vshll.u32 %v268_v46, 16  ;;  %v2118_v21 = vld [vmem:[%s1996_s7 + $0x28] sm:$0xf] }
  0x3d   : > { %816 = vrot.lane.b32.xlu0 %v2085_v30, %s1909_s21  ;;  %v450_v51 = vrot.slane %v449_v44, 4  ;;  %v389_v57 = vshrl.u32 %v269_v47, 16  ;;  %v377_v61 = vrot.slane %v375_v53, 4  ;;  %v392_v62 = vshll.u32 %v269_v47, 16  ;;  %v284_v26 = vld [vmem:[%s1996_s7 + $0x2c] sm:$0x1] }
  0x3e   : > { %844 = vrot.lane.b32.xlu1 %v1640_v31, %s1907_s13  ;;  %v441_v55 = vsel %vm2023_vm2, %v436_v50, %v440_v43  ;;  %v2105_v0 = vpack.c.b16 %v881_v49, %v880_v48  ;;  %v380_v2 = vrot.slane %v378_v56, 5  ;;  %v384_v3 = vshll.u32 %v285_v52, 16  ;;  %v2128_v31 = vld [vmem:[%s1996_s7 + $0x2c] sm:$0xf0]  ;;  %v1528_v38 = vld [vmem:[%s1996_s7 + $0xc8] sm:$0xf] }
  0x3f   : > { %v455_v59 = vsel %vm2023_vm2, %v450_v51, %v454_v45  ;;  %v802_v60 = vunpack.c.l.b16 %v441_v55  ;;  %v391_v5 = vrot.slane %v389_v57, 4  ;;  %v394_v6 = vrot.slane %v392_v62, 5  ;;  %v1659_v44 = vld [vmem:[%s1996_s7 + $0x70] sm:$0xf]  ;;  %v1744_v45 = vld [vmem:[%s1996_s7 + $0x74] sm:$0xf0] }
  0x40   : > { %v803_v1 = vunpack.c.l.b16 %v455_v59  ;;  %v347_v7 = vshrl.u32 %v266_v58, 16  ;;  %v350_v8 = vshll.u32 %v266_v58, 16  ;;  %v381_v14 = vor.u32 %v380_v2, %v377_v61  ;;  %v1655_v46 = vld [vmem:[%s1996_s7 + $0x60] sm:$0xf]  ;;  %v1743_v47 = vld [vmem:[%s1996_s7 + $0x64] sm:$0xf0] }
  0x41   : > { %v361_v16 = vshrl.u32 %v267_v63, 16  ;;  %v398_v25 = vshll.u32 %v286_v4, 16  ;;  %v364_v29 = vshll.u32 %v267_v63, 16  ;;  %v386_v33 = vrot.slane %v384_v3, 5  ;;  %v2142_v51 = vld [vmem:[%s1996_s7 + $0x78] sm:$0xf] }
  0x42   : > { %v2108_v9 = vpack.c.b16 %v803_v1, %v802_v60  ;;  %v349_v22 = vrot.slane %v347_v7, 4  ;;  %v352_v23 = vrot.slane %v350_v8, 5  ;;  %v382_v32 = vrot.slane %v381_v14, 4  ;;  %v2145_v52 = vld [vmem:[%s1996_s7 + $0x7c] sm:$0xf0] }
  0x43   : > { %v363_v27 = vrot.slane %v361_v16, 4  ;;  %v395_v34 = vor.u32 %v394_v6, %v391_v5  ;;  %v356_v35 = vshll.u32 %v283_v15, 16  ;;  %v366_v37 = vrot.slane %v364_v29, 5  ;;  %v1525_v59 = vld [vmem:[%s1996_s7 + $0xb0] sm:$0xf] }
  0x44   : > { %814 = vrot.lane.b32.xlu2 %v2108_v9, %s1909_s21  ;;  %v353_v36 = vor.u32 %v352_v23, %v349_v22  ;;  %v513_v40 = vshrl.u32 %v1527_v24, 16  ;;  %v516_v41 = vshll.u32 %v1527_v24, 16  ;;  %v1612_v42 = vor.u32 %v1732_v11, %v1611_v10  ;;  %v1543_v62 = vld [vmem:[%s1996_s7 + $0xc4] sm:$0x1]  ;;  %v1526_v6 = vld [vmem:[%s1996_s7 + $0xb8] sm:$0xf] }
  0x45   : > { %892 = vrot.lane.b32.xlu0 %v2105_v0, %s1908_s14  ;;  %v2131_v43 = vor.u32 %v1736_v13, %v1627_v12  ;;  %v370_v48 = vshll.u32 %v284_v26, 16  ;;  %v2137_v49 = vor.u32 %v1735_v18, %v1623_v17  ;;  %v1644_v50 = vor.u32 %v2128_v31, %v2118_v21  ;;  %v1544_v10 = vld [vmem:[%s1996_s7 + $0xcc] sm:$0x1]  ;;  %v1541_v17 = vld [vmem:[%s1996_s7 + $0xb4] sm:$0x1] }
  0x46   : > { %722 = vrot.lane.b32.xlu1 %v1596_v54, %s1902_s8  ;;  %v400_v53 = vrot.slane %v398_v25, 5  ;;  %v367_v54 = vor.u32 %v366_v37, %v363_v27  ;;  %v396_v55 = vrot.slane %v395_v34, 4  ;;  %v358_v56 = vrot.slane %v356_v35, 5  ;;  %v1542_v18 = vld [vmem:[%s1996_s7 + $0xbc] sm:$0x1] }
  0x47   : > { %v527_v57 = vshrl.u32 %v1528_v38, 16  ;;  %v530_v58 = vshll.u32 %v1528_v38, 16  ;;  %v387_v60 = vsel %vm2023_vm2, %v382_v32, %v386_v33  ;;  %v354_v61 = vrot.slane %v353_v36, 4  ;;  %v1551_v25 = vld [vmem:[%s1996_s7 + $0x38] sm:$0xf] }
  0x48   : > { %v515_v63 = vrot.slane %v513_v40, 4  ;;  %v518_v1 = vrot.slane %v516_v41, 5  ;;  %v368_v2 = vrot.slane %v367_v54, 4  ;;  %v372_v3 = vrot.slane %v370_v48, 5  ;;  %v1552_v36 = vld [vmem:[%s1996_s7 + $0x40] sm:$0xf] }
  0x49   : > { %v529_v4 = vrot.slane %v527_v57, 4  ;;  %v532_v5 = vrot.slane %v530_v58, 5  ;;  %v2155_v7 = vor.u32 %v1744_v45, %v1659_v44  ;;  %v2157_v8 = vor.u32 %v1743_v47, %v1655_v46 }
  0x4a   : > { %v485_v11 = vshrl.u32 %v1525_v59, 16  ;;  %v488_v12 = vshll.u32 %v1525_v59, 16  ;;  %v1600_v13 = vor.u32 %v2145_v52, %v2142_v51  ;;  %v401_v14 = vsel %vm2023_vm2, %v396_v55, %v400_v53  ;;  %v1549_v55 = vld [vmem:[%s1996_s7 + $0x28] sm:$0xf] }
  0x4b   : > { %v2166_v15 = vunpack.c.l.b16 %v387_v60  ;;  %v522_v16 = vshll.u32 %v1543_v62, 16  ;;  %v519_v21 = vor.u32 %v518_v1, %v515_v63  ;;  %v499_v24 = vshrl.u32 %v1526_v6, 16  ;;  %v1550_v60 = vld [vmem:[%s1996_s7 + $0x30] sm:$0xf]  ;;  %v1567_v63 = vld [vmem:[%s1996_s7 + $0x3c] sm:$0x1] }
  0x4c   : > { %796 = vrot.lane.b32.xlu2 %v2137_v49, %s1905_s11  ;;  %v487_v22 = vrot.slane %v485_v11, 4  ;;  %v490_v23 = vrot.slane %v488_v12, 5  ;;  %v359_v26 = vsel %vm2023_vm2, %v354_v61, %v358_v56  ;;  %v373_v27 = vsel %vm2023_vm2, %v368_v2, %v372_v3  ;;  %v1568_v12 = vld [vmem:[%s1996_s7 + $0x44] sm:$0x1] }
  0x4d   : > { %770 = vrot.lane.b32.xlu0 %v1612_v42, %s1903_s9  ;;  %v533_v29 = vor.u32 %v532_v5, %v529_v4  ;;  %v536_v31 = vshll.u32 %v1544_v10, 16  ;;  %v494_v33 = vshll.u32 %v1541_v17, 16  ;;  %v501_v34 = vrot.slane %v499_v24, 4  ;;  %v1565_v5 = vld [vmem:[%s1996_s7 + $0x2c] sm:$0x1] }
  0x4e   : > { %798 = vrot.lane.b32.xlu1 %v2131_v43, %s1905_s11  ;;  %v491_v32 = vor.u32 %v490_v23, %v487_v22  ;;  %v502_v35 = vshll.u32 %v1526_v6, 16  ;;  %v733_v37 = vunpack.c.l.b16 %v401_v14  ;;  %v508_v38 = vshll.u32 %v1542_v18, 16 }
  0x4f   : > { %v651_v40 = vshrl.u32 %v1551_v25, 16  ;;  %v654_v41 = vshll.u32 %v1551_v25, 16  ;;  %v730_v42 = vunpack.c.l.b16 %v359_v26  ;;  %v520_v44 = vrot.slane %v519_v21, 4  ;;  %v1566_v21 = vld [vmem:[%s1996_s7 + $0x34] sm:$0x1] }
  0x50   : > { %v524_v45 = vrot.slane %v522_v16, 5  ;;  %v504_v46 = vrot.slane %v502_v35, 5  ;;  %v731_v47 = vunpack.c.l.b16 %v373_v27  ;;  %v534_v48 = vrot.slane %v533_v29, 4 }
  0x51   : > { %v538_v53 = vrot.slane %v536_v31, 5  ;;  %v665_v54 = vshrl.u32 %v1552_v36, 16  ;;  %v492_v56 = vrot.slane %v491_v32, 4  ;;  %v496_v57 = vrot.slane %v494_v33, 5 }
  0x52   : > { %v505_v58 = vor.u32 %v504_v46, %v501_v34  ;;  %v668_v59 = vshll.u32 %v1552_v36, 16  ;;  %v737_v61 = vpack.c.b16 %v733_v37, %v2166_v15  ;;  %v510_v62 = vrot.slane %v508_v38, 5  ;;  %v1631_v36 = vld [vmem:[%s1996_s7 + $0x108] sm:$0xf] }
  0x53   : > { %v653_v1 = vrot.slane %v651_v40, 4  ;;  %v667_v3 = vrot.slane %v665_v54, 4  ;;  %v623_v6 = vshrl.u32 %v1549_v55, 16  ;;  %v736_v10 = vpack.c.b16 %v731_v47, %v730_v42  ;;  %v1737_v42 = vld [vmem:[%s1996_s7 + $0x10c] sm:$0xf0] }
  0x54   : > { %872 = vrot.lane.b32.xlu2 %v2157_v8, %s1904_s10  ;;  %v506_v2 = vrot.slane %v505_v58, 4  ;;  %v670_v4 = vrot.slane %v668_v59, 5  ;;  %v525_v11 = vsel %vm2023_vm2, %v520_v44, %v524_v45  ;;  %v626_v14 = vshll.u32 %v1549_v55, 16 }
  0x55   : > { %846 = vrot.lane.b32.xlu0 %v1644_v50, %s1907_s13  ;;  %v656_v50 = vrot.slane %v654_v41, 5  ;;  %v637_v16 = vshrl.u32 %v1550_v60, 16  ;;  %v539_v15 = vsel %vm2023_vm2, %v534_v48, %v538_v53  ;;  %v497_v17 = vsel %vm2023_vm2, %v492_v56, %v496_v57 }
  0x56   : > { %874 = vrot.lane.b32.xlu1 %v2155_v7, %s1904_s10  ;;  %v660_v18 = vshll.u32 %v1567_v63, 16  ;;  %v625_v22 = vrot.slane %v623_v6, 4  ;;  %v511_v23 = vsel %vm2023_vm2, %v506_v2, %v510_v62  ;;  %v628_v25 = vrot.slane %v626_v14, 5  ;;  %v1663_v63 = vld [vmem:[%s1996_s7 + $0x80] sm:$0xf] }
  0x57   : > { %v657_v24 = vor.u32 %v656_v50, %v653_v1  ;;  %v632_v26 = vshll.u32 %v1565_v5, 16  ;;  %v671_v27 = vor.u32 %v670_v4, %v667_v3  ;;  %v674_v29 = vshll.u32 %v1568_v12, 16  ;;  %v1745_v1 = vld [vmem:[%s1996_s7 + $0x84] sm:$0xf0]  ;;  %v1615_v5 = vld [vmem:[%s1996_s7 + $0xc0] sm:$0xf] }
  0x58   : > { %v639_v31 = vrot.slane %v637_v16, 4  ;;  %v640_v32 = vshll.u32 %v1550_v60, 16  ;;  %v808_v33 = vunpack.c.l.b16 %v525_v11  ;;  %v629_v34 = vor.u32 %v628_v25, %v625_v22  ;;  %v1733_v6 = vld [vmem:[%s1996_s7 + $0xc4] sm:$0xf0]  ;;  %v1647_v11 = vld [vmem:[%s1996_s7 + $0x38] sm:$0xf] }
  0x59   : > { %v646_v35 = vshll.u32 %v1566_v21, 16  ;;  %v809_v37 = vunpack.c.l.b16 %v539_v15  ;;  %v806_v38 = vunpack.c.l.b16 %v497_v17  ;;  %v807_v40 = vunpack.c.l.b16 %v511_v23  ;;  %v1741_v12 = vld [vmem:[%s1996_s7 + $0x3c] sm:$0xf0]  ;;  %v978_v14 = vld [vmem:[%s2553_s1 + $0x10] sm:$0x3]  ;;  %v1747_v23 = vld [vmem:[%s2553_s1 + $0x8] sm:$0xff] }
  0x5a   : > { %v642_v41 = vrot.slane %v640_v32, 5  ;;  %v658_v44 = vrot.slane %v657_v24, 4  ;;  %v662_v45 = vrot.slane %v660_v18, 5  ;;  %v630_v46 = vrot.slane %v629_v34, 4  ;;  %v1100_v15 = vld [vmem:[%s2554_s2] sm:$0x3] }
  0x5b   : > { %v634_v47 = vrot.slane %v632_v26, 5  ;;  %v672_v48 = vrot.slane %v671_v27, 4  ;;  %v676_v53 = vrot.slane %v674_v29, 5  ;;  %v648_v51 = vrot.slane %v646_v35, 5  ;;  %v1746_v24 = vld [vmem:[%s2553_s1] sm:$0xff] }
  0x5c   : > { %742 = vrot.lane.b32.xlu2 %v736_v10, %s1906_s12  ;;  %v643_v54 = vor.u32 %v642_v41, %v639_v31  ;;  %v1632_v52 = vor.u32 %v1737_v42, %v1631_v36  ;;  %v2206_v56 = vpack.c.b16 %v809_v37, %v808_v33  ;;  %v663_v58 = vsel %vm2023_vm2, %v658_v44, %v662_v45  ;;  %v1571_v29 = vld [vmem:[%s1996_s7] sm:$0xf]  ;;  %v1722_v31 = vld [vmem:[%s1996_s7 + $0x4] sm:$0xf0]  ;;  %v1575_v37 = vld [vmem:[%s1996_s7 + $0x10] sm:$0xf] }
  0x5d   : > { %724 = vrot.lane.b32.xlu0 %v1600_v13, %s1902_s8  ;;  %v2204_v13 = vpack.c.b16 %v807_v40, %v806_v38  ;;  %v635_v57 = vsel %vm2023_vm2, %v630_v46, %v634_v47  ;;  %v677_v59 = vsel %vm2023_vm2, %v672_v48, %v676_v53  ;;  %v884_v50 = vunpack.c.l.b16 %v663_v58  ;;  %v1723_v38 = vld [vmem:[%s1996_s7 + $0x14] sm:$0xf0] }
  0x5e   : > { %744 = vrot.lane.b32.xlu1 %v737_v61, %s1906_s12  ;;  %v644_v55 = vrot.slane %v643_v54, 4  ;;  %v882_v61 = vunpack.c.l.b16 %v635_v57  ;;  %v885_v2 = vunpack.c.l.b16 %v677_v59  ;;  %v2223_v39 = vor.u32 %v1745_v1, %v1663_v63  ;;  %v1579_v59 = vld [vmem:[%s1996_s7 + $0x20] sm:$0xf] }
  0x5f   : > { %v1616_v10 = vor.u32 %v1733_v6, %v1615_v5  ;;  %v988_v16 = vunpack.c.l.b16 %v978_v14  ;;  %v1648_v17 = vor.u32 %v1741_v12, %v1647_v11  ;;  %v1116_v21 = vsel %vm1003_vm3, %v1100_v15, 0 }
  0x60   : > { %v649_v60 = vsel %vm2023_vm2, %v644_v55, %v648_v51  ;;  %v2227_v4 = vpack.c.b16 %v885_v2, %v884_v50  ;;  %1750 = vmatpush.bf16.msra.mxu2 %v1116_v21  ;;  %1751 = vmatpush.bf16.msra.mxu3 %v1116_v21  ;;  %v1572_v33 = vor.u32 %v1722_v31, %v1571_v29 }
  0x61   : > { %v883_v62 = vunpack.c.l.b16 %v649_v60  ;;  %v991_v18 = vpack.c.b16 %v988_v16, %v988_v16  ;;  %1749 = vmatpush.bf16.msra.mxu1 %v1116_v21  ;;  %v1576_v41 = vor.u32 %v1723_v38, %v1575_v37  ;;  %v1724_v60 = vld [vmem:[%s1996_s7 + $0x24] sm:$0xf0] }
  0x62   : > { %v1580_v1 = vor.u32 %v1724_v60, %v1579_v59 }
  0x63   : > { %v2225_v3 = vpack.c.b16 %v883_v62, %v882_v61  ;;  %v1005_v22 = vsel %vm1003_vm3, %v991_v18, 0  ;;  %1679 = vmatmul.msk.bf16.vlgmr.msra.gmra.mxu2 %vm898_vm4, %v2131_v43  ;;  %1680 = vmatmul.msk.bf16.vlgmr.msra.gmra.mxu3 %vm898_vm4, %v1632_v52  ;;  %v1725_v18 = vld [vmem:[%s1996_s7 + $0x34] sm:$0xf0] }
  0x64   : > { %818 = vrot.lane.b32.xlu2 %v2204_v13, %s1909_s21  ;;  %1190 = vmatpush.bf16.msrb.mxu2 %v1116_v21 }
  0x65   : > { %800 = vrot.lane.b32.xlu0 %v1632_v52, %s1905_s11  ;;  %1012 = vmatpush.bf16.msra.mxu0 %v1005_v22 }
  0x66   : > { %820 = vrot.lane.b32.xlu1 %v2206_v56, %s1909_s21  ;;  %1256 = vmatpush.bf16.msrb.mxu3 %v1116_v21  ;;  %s241_s21 = sand.u32 1, %s1884_s16  }
  0x67   : > { %1678 = vmatmul.msk.bf16.vlgmr.msra.gmra.mxu1 %vm898_vm4, %v2137_v49  ;;  %s1511_s26 = sshll.u32 %s241_s21, 8 }
  0x68   : > { %1322 = vmatpush.bf16.msrb.mxu1 %v1116_v21  ;;  %s2431_s29 = scalar_lea.vmem [#allocation2], %s1511_s26 }
  0x69   : > { %1013 = vmatpush.bf16.msra.mxu0 %v1747_v23  ;;  %s1383_s8 = sshll.u32 %s2431_s29, 4  ;;  %s1384_s8 = int_to_ptr.vmem [resolvable:$true] %s1383_s8 }
  0x6c   : > { %894 = vrot.lane.b32.xlu2 %v2225_v3, %s1908_s14 }
  0x6d   : > { %876 = vrot.lane.b32.xlu0 %v2223_v39, %s1904_s10  ;;  %1014 = vmatpush.bf16.msra.mxu0 %v1746_v24 }
  0x6e   : > { %896 = vrot.lane.b32.xlu1 %v2227_v4, %s1908_s14 }
  0x71   : > { %1125 = vmatpush.bf16.msrb.mxu0 %v1116_v21 }
  0x73   : > { %1681 = vmatmul.msk.bf16.vlgmr.msrb.gmra.mxu2 %vm898_vm4, %v2108_v9  ;;  %1693 = vmatmul.msk.bf16.vlgmr.msrb.gmra.mxu3 %vm898_vm4, %v2013_v19 }
  0x74   : > { %772 = vrot.lane.b32.xlu2 %v1616_v10, %s1903_s9  ;;  %s1370_s9 = scalar_lea.sflag [#allocation3], %s241_s21 }
  0x77   : > { %1705 = vmatmul.msk.bf16.vlgmr.msrb.gmra.mxu1 %vm898_vm4, %v2055_v28 }
  0x7c   : > { %848 = vrot.lane.b32.xlu2 %v1648_v17, %s1907_s13  ;;  %v1583_v17 = vld [vmem:[%s1996_s7 + $0x30] sm:$0xf]  ;;  %s1385_s7 = sshll.u32 %s1382_s18, 4  ;;  %s1386_s7 = int_to_ptr.hbm [resolvable:$true] %s1385_s7 }
  0x7d   : > { %v1584_v21 = vor.u32 %v1725_v18, %v1583_v17  ;;  %s1836_s10 = sshra.s32 %s1386_s7, 4  ;;  %s1837_s10 = int_to_ptr.hbm [resolvable:$true] %s1836_s10 }
  0x7e   : > { %s1838_s11 = scalar_lea.hbm %s1837_s10, 256  ;;  %p1843_p1 = scmp.lt.s32.totalorder %s1837_s10, %s2556_s4 }
  0x7f   : > { %p1839_p12 = scmp.ne.s32.totalorder %s1837_s10, %s1838_s11  ;;  %p1844_p2 = scmp.lt.s32.totalorder %s1842_s22, %s1838_s11 }
  0x81   : > { %p1840_p13 = pnand %p1839_p12, %p1976_p4  ;;  %p1845_p3 = por %p1844_p2, %p1843_p1 }
  0x83   : > { %1682 = vmatmul.msk.bf16.gmra.mxu2 %vm898_vm4, %v2085_v30  ;;  %1694 = vmatmul.msk.bf16.gmra.mxu3 %vm898_vm4, %v2157_v8  ;;  %p1841_p0 = pneg %p1840_p13 }
  0x85   : > { %p1846_p5 = pnand %p1845_p3, %p1841_p0 }
  0x87   : > { %v843_v43 = vpop.permute.xlu2 %842  ;;  %1706 = vmatmul.msk.bf16.gmra.mxu1 %vm898_vm4, %v2105_v0 }
  0x8e   : > { %v719_v25 = vpop.permute.xlu0 %718 }
  0x8f   : > { %v767_v49 = vpop.permute.xlu1 %766  ;;  %v721_v26 = vpop.permute.xlu2 %720  ;;  %v901_v9 = vsel %vm898_vm4, %v1572_v33, %v719_v25 }
  0x90   : > { %v904_v47 = vsel %vm898_vm4, %v1576_v41, %v721_v26 }
  0x93   : > { %1683 = vmatmul.msk.bf16.gmra.mxu2 %vm898_vm4, %v2204_v13  ;;  %1695 = vmatmul.msk.bf16.gmra.mxu3 %vm898_vm4, %v2155_v7 }
  0x96   : > { %v871_v27 = vpop.permute.xlu0 %870 }
  0x97   : > { %v795_v32 = vpop.permute.xlu1 %794  ;;  %1707 = vmatmul.msk.bf16.gmra.mxu1 %vm898_vm4, %v2225_v3 }
  0x9e   : > { %v739_v19 = vpop.permute.xlu0 %738  ;;  %v815_v34 = vpop.permute.xlu2 %814 }
  0x9f   : > { %v913_v28 = vsel %vm911_vm5, %v901_v9, %v739_v19 }
  0xa0   : > { %v922_v35 = vsel %vm920_vm6, %v913_v28, %v767_v49  ;;  %v891_v36 = vpop.permute.xlu1 %890 }
  0xa1   : > { %v931_v30 = vsel %vm929_vm7, %v922_v35, %v795_v32 }
  0xa2   : > { %v940_v40 = vsel %vm938_vm8, %v931_v30, %v815_v34 }
  0xa3   : > { %v949_v8 = vsel %vm947_vm9, %v940_v40, %v843_v43  ;;  %1684 = vmatmul.msk.bf16.gmra.mxu2 %vm898_vm4, %v2206_v56  ;;  %1696 = vmatmul.msk.bf16.gmra.mxu3 %vm898_vm4, %v2223_v39 }
  0xa4   : > { %v958_v0 = vsel %vm956_vm10, %v949_v8, %v871_v27 }
  0xa5   : > { %v967_v42 = vsel %vm965_vm11, %v958_v0, %v891_v36 }
  0xa6   : > { %1673 = vmatmul.msk.bf16.vlgmr.msra.gmra.mxu0 %vm994_vm12, %v967_v42  ;;  %v797_v45 = vpop.permute.xlu2 %796 }
  0xa7   : > { %v741_v44 = vpop.permute.xlu0 %740  ;;  %1708 = vmatmul.msk.bf16.gmra.mxu1 %vm898_vm4, %v2227_v4 }
  0xa8   : > { %v769_v46 = vpop.permute.xlu1 %768  ;;  %v915_v48 = vsel %vm911_vm5, %v904_v47, %v741_v44 }
  0xa9   : > { %v924_v53 = vsel %vm920_vm6, %v915_v48, %v769_v46 }
  0xaa   : > { %v933_v52 = vsel %vm929_vm7, %v924_v53, %v797_v45 }
  0xae   : > { %v873_v51 = vpop.permute.xlu2 %872 }
  0xaf   : > { %v817_v54 = vpop.permute.xlu0 %816 }
  0xb0   : > { %v845_v55 = vpop.permute.xlu1 %844  ;;  %v942_v57 = vsel %vm938_vm8, %v933_v52, %v817_v54 }
  0xb1   : > { %v951_v58 = vsel %vm947_vm9, %v942_v57, %v845_v55 }
  0xb2   : > { %v960_v61 = vsel %vm956_vm10, %v951_v58, %v873_v51 }
  0xb6   : > { %v743_v62 = vpop.permute.xlu2 %742 }
  0xb7   : > { %v893_v13 = vpop.permute.xlu0 %892 }
  0xb8   : > { %v723_v63 = vpop.permute.xlu1 %722  ;;  %v969_v7 = vsel %vm965_vm11, %v960_v61, %v893_v13 }
  0xb9   : > { %1674 = vmatmul.msk.bf16.gmra.mxu0 %vm994_vm12, %v969_v7  ;;  %v907_v50 = vsel %vm898_vm4, %v1580_v1, %v723_v63 }
  0xba   : > { %v917_v5 = vsel %vm911_vm5, %v907_v50, %v743_v62 }
  0xbe   : > { %v819_v3 = vpop.permute.xlu2 %818 }
  0xbf   : > { %v771_v2 = vpop.permute.xlu0 %770 }
  0xc0   : > { %v799_v6 = vpop.permute.xlu1 %798  ;;  %v926_v10 = vsel %vm920_vm6, %v917_v5, %v771_v2 }
  0xc1   : > { %v935_v11 = vsel %vm929_vm7, %v926_v10, %v799_v6 }
  0xc2   : > { %v944_v12 = vsel %vm938_vm8, %v935_v11, %v819_v3 }
  0xc6   : > { %v895_v14 = vpop.permute.xlu2 %894 }
  0xc7   : > { %v847_v56 = vpop.permute.xlu0 %846 }
  0xc8   : > { %v953_v39 = vsel %vm947_vm9, %v944_v12, %v847_v56  ;;  %v875_v16 = vpop.permute.xlu1 %874 }
  0xc9   : > { %v962_v15 = vsel %vm956_vm10, %v953_v39, %v875_v16 }
  0xca   : > { %v971_v4 = vsel %vm965_vm11, %v962_v15, %v895_v14 }
  0xcb   : > { %1675 = vmatmul.msk.bf16.gmra.mxu0 %vm994_vm12, %v971_v4 }
  0xce   : > { %v773_v43 = vpop.permute.xlu2 %772 }
  0xcf   : > { %v725_v22 = vpop.permute.xlu0 %724 }
  0xd0   : > { %v745_v23 = vpop.permute.xlu1 %744  ;;  %v910_v24 = vsel %vm898_vm4, %v1584_v21, %v725_v22 }
  0xd1   : > { %v919_v25 = vsel %vm911_vm5, %v910_v24, %v745_v23 }
  0xd2   : > { %v928_v26 = vsel %vm920_vm6, %v919_v25, %v773_v43 }
  0xd6   : > { %v849_v32 = vpop.permute.xlu2 %848 }
  0xd7   : > { %v801_v49 = vpop.permute.xlu0 %800 }
  0xd8   : > { %v821_v27 = vpop.permute.xlu1 %820  ;;  %v937_v29 = vsel %vm929_vm7, %v928_v26, %v801_v49  ;;  %v1036_v26 = vld [vmem:[%s2555_s3] sm:$0x1] }
  0xd9   : > { %v946_v31 = vsel %vm938_vm8, %v937_v29, %v821_v27  ;;  %v2382_v29 = vld [vmem:[%s2555_s3 + $0x3] ss:$0 sm:$0xff] }
  0xda   : > { %v955_v33 = vsel %vm947_vm9, %v946_v31, %v849_v32 }
  0xdf   : > { %v877_v9 = vpop.permute.xlu0 %876 }
  0xe0   : > { %v964_v19 = vsel %vm956_vm10, %v955_v33, %v877_v9  ;;  %v897_v28 = vpop.permute.xlu1 %896 }
  0xe1   : > { %v973_v34 = vsel %vm965_vm11, %v964_v19, %v897_v28 }
  0xe2   : > { %1676 = vmatmul.msk.bf16.gmra.mxu0 %vm994_vm12, %v973_v34 }
  0xe4   : > { %v1132_v0 = vpop.f32.mrf.mxu1 }
  0xe5   : > { %v1133_v28 = vadd.f32 %v2382_v29, %v1132_v0  ;;  %v2402_v0 = vld [vmem:[%s2555_s3 + $0x2] ss:$0 sm:$0xff] }
  0xe6   : > { %v2338_v40 = vpop.f32.mrf.mxu2  ;;  %v2340_v8 = vpop.f32.mrf.mxu3 }
  0xec   : > { %v2352_v47 = vpop.f32.mrf.mxu1 }
  0xee   : > { %v2346_v42 = vpop.f32.mrf.mxu2  ;;  %v1144_v44 = vpop.f32.mrf.mxu3 }
  0xf2   : > { %1677 = vmatmul.msk.bf16.vlgmr.msrb.gmra.mxu0 %vm898_vm4, %v2015_v20 }
  0xf4   : > { %v2368_v62 = vpop.f32.mrf.mxu1 }
  0xf6   : > { %v2362_v59 = vpop.f32.mrf.mxu2  ;;  %v2366_v61 = vpop.f32.mrf.mxu3 }
  0xfc   : > { %v2374_v10 = vpop.f32.mrf.mxu1 }
  0xfe   : > { %v2370_v3 = vpop.f32.mrf.mxu2  ;;  %v2372_v6 = vpop.f32.mrf.mxu3 }
 0x104   : > { %v1329_v4 = vpop.f32.mrf.mxu1 }
 0x106   : > { %v1197_v39 = vpop.f32.mrf.mxu2  ;;  %v1263_v15 = vpop.f32.mrf.mxu3 }
 0x10c   : > { %v1331_v24 = vpop.f32.mrf.mxu1 }
 0x10e   : > { %v1199_v21 = vpop.f32.mrf.mxu2  ;;  %v1265_v23 = vpop.f32.mrf.mxu3 }
 0x114   : > { %v1334_v19 = vpop.f32.mrf.mxu1 }
 0x116   : > { %v1202_v31 = vpop.f32.mrf.mxu2  ;;  %v1268_v33 = vpop.f32.mrf.mxu3 }
 0x123   : > { %v2328_v35 = vpop.f32.mrf.mxu0 }
 0x124   : > { %v1039_v45 = vmul.f32 %v2328_v35, %v2328_v35 }
 0x12b   : > { %v2330_v36 = vpop.f32.mrf.mxu0 }
 0x12c   : > { %v1040_v20 = vmul.f32 %v2330_v36, %v2330_v36 }
 0x12e   : > { %v1047_v48 = vadd.f32 %v1040_v20, %v1039_v45  ;;  %v2390_v20 = vld [vmem:[%s2555_s3 + $0x1] ss:$0 sm:$0xff]  ;;  %v1145_v45 = vadd.f32 %v2382_v29, %v1144_v44  ;;  %v1264_v44 = vadd.f32 %v2382_v29, %v1263_v15 }
 0x136   : > { %v2332_v30 = vpop.f32.mrf.mxu0 }
 0x137   : > { %v1041_v46 = vmul.f32 %v2332_v30, %v2332_v30 }
 0x139   : > { %v1048_v51 = vadd.f32 %v1047_v48, %v1041_v46  ;;  %v1198_v46 = vadd.f32 %v2382_v29, %v1197_v39  ;;  %v1330_v48 = vadd.f32 %v2382_v29, %v1329_v4  ;;  %v1332_v4 = vadd.f32 %v2382_v29, %v1331_v24 }
 0x13a   : > { %v1269_v24 = vadd.f32 %v2382_v29, %v1268_v33  ;;  %v1140_v33 = vadd.f32 %v2382_v29, %v2346_v42 }
 0x13e   : > { %v2334_v37 = vpop.f32.mrf.mxu0 }
 0x13f   : > { %v1042_v53 = vmul.f32 %v2334_v37, %v2334_v37 }
 0x141   : > { %v1049_v55 = vadd.f32 %v1048_v51, %v1042_v53 }
 0x148   : > { %v2336_v38 = vpop.f32.mrf.mxu0 }
 0x149   : > { %v1043_v52 = vmul.f32 %v2336_v38, %v2336_v38 }
 0x14b   : > { %v1050_v58 = vadd.f32 %v1049_v55, %v1043_v52 }
 0x150   : > { %v2342_v41 = vpop.f32.mrf.mxu0 }
 0x151   : > { %v1044_v57 = vmul.f32 %v2342_v41, %v2342_v41 }
 0x153   : > { %v1051_v13 = vadd.f32 %v1050_v58, %v1044_v57  ;;  %v1149_v57 = vmax.f32 %v1133_v28, 0.0 }
 0x15f   : > { %v2356_v54 = vpop.f32.mrf.mxu0 }
 0x160   : > { %v1045_v60 = vmul.f32 %v2356_v54, %v2356_v54 }
 0x162   : > { %v1052_v7 = vadd.f32 %v1051_v13, %v1045_v60  ;;  %v1135_v13 = vadd.f32 %v2382_v29, %v2352_v47 }
 0x167   : > { %v1033_v63 = vpop.f32.mrf.mxu0 }
 0x168   : > { %v1046_v1 = vmul.f32 %v1033_v63, %v1033_v63 }
 0x16a   : > { %v1053_v50 = vadd.f32 %v1052_v7, %v1046_v1  ;;  %v1214_v7 = vmax.f32 %v1198_v46, 0.0 }
 0x16c   : > { %v1054_v2 = vrot.slane %v1053_v50, 4 }
 0x16e   : > { %v1055_v5 = vadd.f32 %v1054_v2, %v1053_v50  ;;  %v1266_v2 = vadd.f32 %v2382_v29, %v1265_v23  ;;  %v1203_v23 = vadd.f32 %v2382_v29, %v1202_v31 }
 0x16f   : > { %v1127_v28 = vpop.f32.mrf.mxu0 }
 0x170   : > { %v1056_v11 = vrot.slane %v1055_v5, 2 }
 0x172   : > { %v1057_v12 = vadd.f32 %v1056_v11, %v1055_v5  ;;  %v1204_v5 = vpop.f32.mrf.mxu2  ;;  %v1280_v11 = vmax.f32 %v1264_v44, 0.0 }
 0x174   : > { %v1058_v56 = vrot.slane %v1057_v12, 1 }
 0x176   : > { %v1059_v14 = vadd.f32 %v1058_v56, %v1057_v12 }
 0x178   : > { %v1060_v16 = vmul.f32 0.015625, %v1059_v14  ;;  %v1270_v14 = vpop.f32.mrf.mxu3 }
 0x17a   : > { %v1061_v17 = vadd.f32 1e-06, %v1060_v16 }
 0x17c   : > { %1820 = vrsqrt.f32 %v1061_v17  ;;  %vm1068_vm14 = vweird.f32 %v1061_v17 }
 0x182   : > { %v1821_v18 = vpop.eup %1820 }
 0x183   : > { %v1063_v22 = vmul.f32 %v1821_v18, %v1061_v17  ;;  %vm1069_vm13 = vweird.f32 %v1821_v18  ;;  %v1336_v17 = vpop.f32.mrf.mxu1 }
 0x184   : > { %vm1070_vm15 = vmor %vm1068_vm14, %vm1069_vm13 }
 0x185   : > { %v1064_v43 = vmul.f32 %v1821_v18, %v1063_v22 }
 0x187   : > { %v1065_v25 = vmul.f32 0.5, %v1064_v43 }
 0x189   : > { %v1066_v49 = vsub.f32 1.5, %v1065_v25  ;;  %v1281_v25 = vmax.f32 %v1266_v2, 0.0 }
 0x18b   : > { %v1067_v27 = vmul.f32 %v1821_v18, %v1066_v49 }
 0x18d   : > { %v1071_v32 = vsel %vm1070_vm15, %v1821_v18, %v1067_v27  ;;  %v1138_v18 = vadd.f32 %v2382_v29, %v2338_v40 }
 0x18e   : > { %v1072_v9 = vmul.f32 %v1071_v32, %v1036_v26  ;;  %v1347_v32 = vmax.f32 %v1332_v4, 0.0 }
 0x190   : > { %v2385_v34 = vperm.slane %v1072_v9, 0  ;;  %v1335_v9 = vadd.f32 %v2382_v29, %v1334_v19 }
 0x192   : > { %v1076_v53 = vmul.f32 %v2385_v34, %v2332_v30  ;;  %v1081_v51 = vmul.f32 %v2385_v34, %v1033_v63  ;;  %v1077_v52 = vmul.f32 %v2385_v34, %v2334_v37  ;;  %v1078_v55 = vmul.f32 %v2385_v34, %v2336_v38 }
 0x193   : > { %v1154_v63 = vmax.f32 %v1145_v45, 0.0  ;;  %v1346_v37 = vmax.f32 %v1330_v48, 0.0  ;;  %v1200_v38 = vadd.f32 %v2382_v29, %v1199_v21  ;;  %v1079_v47 = vmul.f32 %v2385_v34, %v2342_v41 }
 0x194   : > { %v1085_v30 = vadd.f32 %v2390_v20, %v1076_v53  ;;  %v1090_v58 = vadd.f32 %v2390_v20, %v1081_v51  ;;  %v1086_v60 = vadd.f32 %v2390_v20, %v1077_v52  ;;  %v1087_v56 = vadd.f32 %v2390_v20, %v1078_v55 }
 0x195   : > { %v1150_v21 = vmax.f32 %v1135_v13, 0.0  ;;  %v1215_v43 = vmax.f32 %v1200_v38, 0.0  ;;  %v1088_v26 = vadd.f32 %v2390_v20, %v1079_v47  ;;  %v1074_v27 = vmul.f32 %v2385_v34, %v2328_v35 }
 0x196   : > { %v1094_v1 = vmax.f32 %v1085_v30, %v2402_v0  ;;  %v2418_v50 = vmax.f32 %v1090_v58, %v2402_v0  ;;  %v1095_v12 = vmax.f32 %v1086_v60, %v2402_v0  ;;  %v1096_v40 = vmax.f32 %v1087_v56, %v2402_v0  ;;  %v1207_v60 = vpop.f32.mrf.mxu2 }
 0x197   : > { %v1151_v45 = vmax.f32 %v1138_v18, 0.0  ;;  %v1216_v48 = vmax.f32 %v1203_v23, 0.0  ;;  %v1282_v51 = vmax.f32 %v1269_v24, 0.0  ;;  %v1205_v35 = vadd.f32 %v2382_v29, %v1204_v5 }
 0x198   : > { %v1157_v39 = vadd.f32 %v1149_v57, %v1094_v1  ;;  %v1162_v16 = vadd.f32 %v1154_v63, %v2418_v50  ;;  %v1222_v15 = vadd.f32 %v1214_v7, %v1094_v1  ;;  %v1288_v22 = vadd.f32 %v1280_v11, %v1094_v1  ;;  %v1339_v11 = vpop.f32.mrf.mxu1 }
 0x199   : > { %v1354_v41 = vadd.f32 %v1346_v37, %v1094_v1  ;;  %v1158_v49 = vadd.f32 %v1150_v21, %v1095_v12  ;;  %v1223_v31 = vadd.f32 %v1215_v43, %v1095_v12  ;;  %v1289_v46 = vadd.f32 %v1281_v25, %v1095_v12  ;;  %v1273_v1 = vpop.f32.mrf.mxu3 }
 0x19a   : > { %1165 = vst [vmem:[%s2431_s29 + $0x10] sm:$0xff] %v1157_v39  ;;  %v1355_v53 = vadd.f32 %v1347_v32, %v1095_v12  ;;  %v1271_v52 = vadd.f32 %v2382_v29, %v1270_v14  ;;  %v1159_v44 = vadd.f32 %v1151_v45, %v1096_v40  ;;  %v1097_v19 = vmax.f32 %v1088_v26, %v2402_v0 }
 0x19b   : > { %1170 = vst [vmem:[%s2431_s29 + $0x38] sm:$0xff] %v1162_v16  ;;  %v1083_v55 = vadd.f32 %v2390_v20, %v1074_v27  ;;  %v1080_v42 = vmul.f32 %v2385_v34, %v2356_v54  ;;  %v1224_v57 = vadd.f32 %v1216_v48, %v1096_v40  ;;  %v1348_v30 = vmax.f32 %v1335_v9, 0.0 }
 0x19c   : > { %1687 = vst [vmem:[%s2431_s29 + $0x50] sm:$0xff] %v1222_v15  ;;  %v1337_v58 = vadd.f32 %v2382_v29, %v1336_v17  ;;  %v1152_v13 = vmax.f32 %v1140_v33, 0.0  ;;  %v1193_v63 = vadd.f32 %v2382_v29, %v2362_v59  ;;  %v1290_v7 = vadd.f32 %v1282_v51, %v1096_v40 }
 0x19d   : > { %1699 = vst [vmem:[%s2431_s29 + $0x90] sm:$0xff] %v1288_v22  ;;  %v1128_v37 = vadd.f32 %v2382_v29, %v1127_v28  ;;  %v1259_v54 = vadd.f32 %v2382_v29, %v2366_v61  ;;  %v1356_v38 = vadd.f32 %v1348_v30, %v1096_v40  ;;  %v1217_v2 = vmax.f32 %v1205_v35, 0.0 }
 0x19e   : > { %1711 = vst [vmem:[%s2431_s29 + $0xd0] sm:$0xff] %v1354_v41  ;;  %v1283_v5 = vmax.f32 %v1271_v52, 0.0  ;;  %v1160_v12 = vadd.f32 %v1152_v13, %v1097_v19  ;;  %v1092_v59 = vmax.f32 %v1083_v55, %v2402_v0  ;;  %v1089_v56 = vadd.f32 %v2390_v20, %v1080_v42  ;;  %v1209_v32 = vpop.f32.mrf.mxu2 }
 0x19f   : > { %1166 = vst [vmem:[%s2431_s29 + $0x18] sm:$0xff] %v1158_v49  ;;  %v1075_v47 = vmul.f32 %v2385_v34, %v2330_v36  ;;  %v1325_v61 = vadd.f32 %v2382_v29, %v2368_v62  ;;  %v1225_v14 = vadd.f32 %v1217_v2, %v1097_v19  ;;  %v1349_v39 = vmax.f32 %v1337_v58, 0.0  ;;  %v1129_v34 = vpop.f32.mrf.mxu0 }
 0x1a0   : > { %1688 = vst [vmem:[%s2431_s29 + $0x58] sm:$0xff] %v1223_v31  ;;  %v1143_v16 = vadd.f32 %v2382_v29, %v2340_v8  ;;  %v1291_v15 = vadd.f32 %v1283_v5, %v1097_v19  ;;  %v1147_v4 = vmax.f32 %v1128_v37, 0.0  ;;  %v1212_v17 = vmax.f32 %v1193_v63, 0.0 }
 0x1a1   : > { %1700 = vst [vmem:[%s2431_s29 + $0x98] sm:$0xff] %v1289_v46  ;;  %v1278_v18 = vmax.f32 %v1259_v54, 0.0  ;;  %v1357_v21 = vadd.f32 %v1349_v39, %v1097_v19  ;;  %v1208_v36 = vadd.f32 %v2382_v29, %v1207_v60  ;;  %v1098_v22 = vmax.f32 %v1089_v56, %v2402_v0  ;;  %v1275_v33 = vpop.f32.mrf.mxu3 }
 0x1a2   : > { %1712 = vst [vmem:[%s2431_s29 + $0xd8] sm:$0xff] %v1355_v53  ;;  %v1155_v62 = vadd.f32 %v1147_v4, %v1092_v59  ;;  %v1274_v23 = vadd.f32 %v2382_v29, %v1273_v1  ;;  %v1084_v8 = vadd.f32 %v2390_v20, %v1075_v47  ;;  %v1344_v41 = vmax.f32 %v1325_v61, 0.0  ;;  %v1341_v53 = vpop.f32.mrf.mxu1 }
 0x1a3   : > { %1167 = vst [vmem:[%s2431_s29 + $0x20] sm:$0xff] %v1159_v44  ;;  %v1220_v43 = vadd.f32 %v1212_v17, %v1092_v59  ;;  %v1340_v25 = vadd.f32 %v2382_v29, %v1339_v11  ;;  %v1153_v24 = vmax.f32 %v1143_v16, 0.0  ;;  %v1286_v49 = vadd.f32 %v1278_v18, %v1092_v59 }
 0x1a4   : > { %1689 = vst [vmem:[%s2431_s29 + $0x60] sm:$0xff] %v1224_v57  ;;  %v1130_v40 = vadd.f32 %v2382_v29, %v1129_v34  ;;  %v1195_v26 = vadd.f32 %v2382_v29, %v2370_v3  ;;  %v1352_v27 = vadd.f32 %v1344_v41, %v1092_v59  ;;  %v1218_v31 = vmax.f32 %v1208_v36, 0.0 }
 0x1a5   : > { %1701 = vst [vmem:[%s2431_s29 + $0xa0] sm:$0xff] %v1290_v7  ;;  %v1261_v20 = vadd.f32 %v2382_v29, %v2372_v6  ;;  %v1161_v9 = vadd.f32 %v1153_v24, %v1098_v22  ;;  %v1284_v28 = vmax.f32 %v1274_v23, 0.0  ;;  %v1093_v45 = vmax.f32 %v1084_v8, %v2402_v0 }
 0x1a6   : > { %1713 = vst [vmem:[%s2431_s29 + $0xe0] sm:$0xff] %v1356_v38  ;;  %v1327_v3 = vadd.f32 %v2382_v29, %v2374_v10  ;;  %v1226_v46 = vadd.f32 %v1218_v31, %v1098_v22  ;;  %v1350_v48 = vmax.f32 %v1340_v25, 0.0  ;;  %v1148_v51 = vmax.f32 %v1130_v40, 0.0 }
 0x1a7   : > { %1168 = vst [vmem:[%s2431_s29 + $0x28] sm:$0xff] %v1160_v12  ;;  %v1292_v6 = vadd.f32 %v1284_v28, %v1098_v22  ;;  %v1210_v35 = vadd.f32 %v2382_v29, %v1209_v32  ;;  %v1213_v52 = vmax.f32 %v1195_v26, 0.0  ;;  %v1276_v44 = vadd.f32 %v2382_v29, %v1275_v33 }
 0x1a8   : > { %1690 = vst [vmem:[%s2431_s29 + $0x68] sm:$0xff] %v1225_v14  ;;  %v1358_v0 = vadd.f32 %v1350_v48, %v1098_v22  ;;  %v1279_v10 = vmax.f32 %v1261_v20, 0.0  ;;  %v1156_v19 = vadd.f32 %v1148_v51, %v1093_v45  ;;  %v1342_v55 = vadd.f32 %v2382_v29, %v1341_v53 }
 0x1a9   : > { %1702 = vst [vmem:[%s2431_s29 + $0xa8] sm:$0xff] %v1291_v15  ;;  %v1345_v42 = vmax.f32 %v1327_v3, 0.0  ;;  %v1221_v57 = vadd.f32 %v1213_v52, %v1093_v45  ;;  %v1219_v58 = vmax.f32 %v1210_v35, 0.0  ;;  %v1285_v13 = vmax.f32 %v1276_v44, 0.0 }
 0x1aa   : > { %1714 = vst [vmem:[%s2431_s29 + $0xe8] sm:$0xff] %v1357_v21  ;;  %v1287_v30 = vadd.f32 %v1279_v10, %v1093_v45  ;;  %v1351_v63 = vmax.f32 %v1342_v55, 0.0 }
 0x1ab   : > { %1163 = vst [vmem:[%s2431_s29] sm:$0xff] %v1155_v62  ;;  %v1353_v60 = vadd.f32 %v1345_v42, %v1093_v45  ;;  %v1227_v29 = vadd.f32 %v1219_v58, %v2418_v50  ;;  %v1293_v7 = vadd.f32 %v1285_v13, %v2418_v50 }
 0x1ac   : > { %1685 = vst [vmem:[%s2431_s29 + $0x40] sm:$0xff] %v1220_v43  ;;  %v1359_v37 = vadd.f32 %v1351_v63, %v2418_v50 }
 0x1ad   : > { %1697 = vst [vmem:[%s2431_s29 + $0x80] sm:$0xff] %v1286_v49 }
 0x1ae   : > { %1709 = vst [vmem:[%s2431_s29 + $0xc0] sm:$0xff] %v1352_v27 }
 0x1af   : > { %1169 = vst [vmem:[%s2431_s29 + $0x30] sm:$0xff] %v1161_v9 }
 0x1b0   : > { %1691 = vst [vmem:[%s2431_s29 + $0x70] sm:$0xff] %v1226_v46 }
 0x1b1   : > { %1703 = vst [vmem:[%s2431_s29 + $0xb0] sm:$0xff] %v1292_v6 }
 0x1b2   : > { %1715 = vst [vmem:[%s2431_s29 + $0xf0] sm:$0xff] %v1358_v0 }
 0x1b3   : > { %1164 = vst [vmem:[%s2431_s29 + $0x8] sm:$0xff] %v1156_v19 }
 0x1b4   : > { %1686 = vst [vmem:[%s2431_s29 + $0x48] sm:$0xff] %v1221_v57 }
 0x1b5   : > { %1698 = vst [vmem:[%s2431_s29 + $0x88] sm:$0xff] %v1287_v30 }
 0x1b6   : > { %1710 = vst [vmem:[%s2431_s29 + $0xc8] sm:$0xff] %v1353_v60 }
 0x1b7   : > { %1692 = vst [vmem:[%s2431_s29 + $0x78] sm:$0xff] %v1227_v29 }
 0x1b8   : > { %1704 = vst [vmem:[%s2431_s29 + $0xb8] sm:$0xff] %v1293_v7 }
 0x1b9   : > { %1716 = vst [vmem:[%s2431_s29 + $0xf8] sm:$0xff] %v1359_v37 }
 0x1ba   : > { %1849 = shalt.err (!%p1846_p5)
}
 0x1bb   : > { %s1910_s21 = smov 128  }
 0x1bc   : > { %1753 = dma.vmem_to_hbm [thread:$0]  (%p1976_p4), %s1384_s8, 4096, %s1386_s7, %s1370_s9, %s1910_s21, %s1910_s21, %s1906_s12  }
 0x1bd PF: > { %p1759_p6 = scmp.ge.s32.totalorder %s1900_s20, 2  ;;  %s1400_s29 = sand.u32 1, %s1880_s15  }
 0x1be   : > { %s1401_s30 = scalar_lea.sflag [#allocation3], %s1400_s29 }
 0x1bf   : > { %p1756_p7 = pnand %p1759_p6, %p1983_p8 }
 0x1c1   : > { %p1757_p9 = pneg %p1756_p7 }
 0x1c3   : > { %1875 = dma.done.wait (%p1757_p9), %s1401_s30, 4096  }
 0x1c4   : > { %1877 = vsyncadd (%p1757_p9), %s1401_s30, 4294963200  ;;  %s17_s20 = sadd.s32 1, %s1900_s20   ;;  %s2561_s15 = smov %s1884_s16 }
 0x1c5   : > { %p14_p10 = scmp.ge.s32.totalorder %s17_s20, 4   ;;  %s2562_s16 = smov %s1888_s17 }
 0x1c6   : > { %s2563_s17 = smov %s1989_s28  ;;  %s2564_s18 = smov %s1896_s19 }
 0x1c7   : > { %s2565_s19 = smov %s2567_s23  ;;  %16 = sbr.rel (!%p14_p10) target bundleno = 4 (0x4), region = 88 }
 0x1cc   :  { %1407 = vsyncpa [#allocation3], 1 }
 0x1cd   :  { %1409 = vsyncpa [#allocation3 + $0x1], 1 }

</bundles_post_ra>
